<compile_context>
chip_gen: v5e
topology: v5e:2x2
jax: 0.10.0
libtpu: 0.0.40
codegen_flags: <defaults>
</compile_context>

<pallas_src>
import functools

import jax
import jax.numpy as jnp
from jax.experimental import pallas as pl
from jax.experimental.pallas import tpu as pltpu

_R_PAD = 128  # router lane padding: rw / blw stores are lane-dense (full vst)


# ----------------------------------------------------------------------------
# Pallas kernel: one token tile does router -> softmax -> routing -> TopK SAE
# ----------------------------------------------------------------------------
def _route_sae_kernel(
    x_ref,    # (R, TN, H)   f32   routed-layer activations (layer-major)
    wr_ref,   # (H, 128)     bf16  router weight, lane-padded with zeros past R
    we_ref,   # (H, Lat)     bf16  encoder weight (transposed torch layout)
    wd_ref,   # (Lat, H)     bf16  decoder weight (transposed torch layout)
    pb_ref,   # (1, H)       f32   pre_bias
    lb_ref,   # (1, Lat)     f32   latent_bias
    *out_refs,
    aggre: str,
    routing: str,
    k: int,
    n_routed: int,
    stn: int,
):
    if routing == "hard":
        blw_ref, xr_ref, lat_ref, xhat_ref, rw_ref = out_refs
    else:  # soft: batch_layer_weights == router_weights -> single output
        xr_ref, lat_ref, xhat_ref, rw_ref = out_refs
        blw_ref = None

    tn = xr_ref.shape[0]

    # ---- router input: accumulate per-layer (tn, H) loads; never keep the
    # whole (R, tn, H) block live (vreg-pressure fix from perf review). -------
    router_in = x_ref[0]
    for r in range(1, n_routed):
        router_in = router_in + x_ref[r]
    if aggre == "mean":
        router_in = router_in / jnp.float32(n_routed)

    # ---- router linear (bf16 MXU, f32 acc) + masked softmax over R lanes ----
    logits = jnp.dot(router_in.astype(jnp.bfloat16), wr_ref[...],
                     preferred_element_type=jnp.float32)          # (tn, 128)
    lane = jax.lax.broadcasted_iota(jnp.int32, logits.shape, 1)
    valid = lane < n_routed
    logits = jnp.where(valid, logits, -jnp.inf)
    m = jnp.max(logits, axis=-1, keepdims=True)
    e = jnp.where(valid, jnp.exp(logits - m), 0.0)
    # Exact division keeps rw (and hence the top-k support) in lockstep with
    # the f32 reference.
    # TODO(synk): pl.reciprocal(..., approx=True) once bit-parity isn't needed.
    rw = e / jnp.sum(e, axis=-1, keepdims=True)
    rw_ref[...] = rw            # lane-dense (tn, 128) store; wrapper slices :R

    # ---- routing -------------------------------------------------------------
    if routing == "soft":
        route_w = rw
    else:  # hard: argmax layer (first index on ties), scaled by its weight
        maxw = jnp.max(rw, axis=-1, keepdims=True)
        first = jnp.min(jnp.where(rw == maxw, lane, _R_PAD),
                        axis=-1, keepdims=True)
        onehot = jnp.where(lane == first, 1.0, 0.0).astype(jnp.float32)
        blw_ref[...] = onehot
        route_w = onehot * maxw

    # ---- routed combine: per-layer loads again (cheap VMEM re-reads) --------
    x_routed = x_ref[0] * route_w[:, 0:1]
    for r in range(1, n_routed):
        x_routed = x_routed + x_ref[r] * route_w[:, r:r + 1]
    xr_ref[...] = x_routed

    # ---- TopK SAE: encode / top-k / decode, sub-tiled over `stn` token rows
    # so the (stn, Lat) top-k working set fits in the vreg file at large tn ---
    pb = pb_ref[...]
    lb = lb_ref[...]

    @pl.loop(0, tn // stn)
    def _(s):
        row = pl.multiple_of(s * stn, stn)
        xs = xr_ref[pl.ds(row, stn), :]                            # (stn, H)
        pre = jnp.dot((xs - pb).astype(jnp.bfloat16), we_ref[...],
                      preferred_element_type=jnp.float32) + lb     # (stn, Lat)

        # k rounds of "remove all copies of the current max" with a per-row
        # remaining-count; the threshold is frozen once >= k values were
        # removed, exactly reproducing lax.top_k's k-th-largest-with-
        # multiplicity threshold with one max + one count reduction per round.
        work = pre
        thr = jnp.full((stn, 1), -jnp.inf, jnp.float32)
        remaining = jnp.full((stn, 1), float(k), jnp.float32)
        for _ in range(k):
            active = remaining > 0.0
            cur = jnp.max(work, axis=-1, keepdims=True)
            hit = jnp.logical_and(work == cur, active)
            thr = jnp.where(active, cur, thr)
            remaining = remaining - jnp.sum(hit.astype(jnp.float32),
                                            axis=-1, keepdims=True)
            work = jnp.where(hit, -jnp.inf, work)
        latents = jnp.where(pre >= thr, pre, 0.0)
        lat_ref[pl.ds(row, stn), :] = latents

        # decode: natural (stn, Lat) @ (Lat, H) MXU feed (pre-transposed wd)
        dec = jnp.dot(latents.astype(jnp.bfloat16), wd_ref[...],
                      preferred_element_type=jnp.float32)          # (stn, H)
        xhat_ref[pl.ds(row, stn), :] = dec + pb
    # TODO(synk): theta (jump-relu) / infer_k inference variants not wired in;
    # the default training path (top-k with self.k) is implemented.


# ----------------------------------------------------------------------------
# Tile sizing (VMEM- and vreg-aware) and wrapper
# ----------------------------------------------------------------------------
def _vmem_budget():
    """Returns (footprint budget, vmem_limit_bytes) for CompilerParams."""
    cap = 64 << 20            # conservative default: v7x per-core VMEM
    try:
        info = pltpu.get_tpu_info()
        cap = int(getattr(info, "vmem_capacity_bytes", cap)) or cap
    except Exception:
        pass
    limit = max(min(cap * 7 // 8, 112 << 20), 32 << 20)   # ~56 MiB on v7x
    return int(limit * 0.8), int(limit)


def _block_bytes(tn, R, H, Lat, hard):
    """Per-grid-step VMEM footprint (double-buffered pipeline)."""
    io = R * tn * H * 4                       # activation block in
    io += tn * (2 * H + Lat + _R_PAD) * 4     # x_routed, x_hat, latents, rw out
    if hard:
        io += tn * _R_PAD * 4                 # batch_layer_weights out
    weights = H * _R_PAD * 2 + 2 * H * Lat * 2 + (H + Lat) * 4
    return 2 * (io + weights)


def _pick_tn(N, R, H, Lat, hard, budget):
    cands = (512, 256, 128, 64, 32, 16, 8)
    feasible = [c for c in cands if _block_bytes(c, R, H, Lat, hard) <= budget]
    if not feasible:
        # TODO(synk): add a Lat-tiled encode/latents variant for SAEs too
        # large for even an 8-token block; fall back and rely on vmem_limit.
        return 8
    for c in feasible:                        # largest tile with >= 2 steps
        if -(-N // c) >= 2:
            return c
    return feasible[-1]                       # tiny N: smallest feasible tile


def _pick_stn(tn, Lat):
    """Sub-tile rows so ~3 live (stn, Lat) f32 arrays fit in ~2/3 of vregs."""
    cap = ((64 * 4096 * 2 // 3) // max(3 * Lat * 4, 1)) // 8 * 8
    stn = max(8, min(tn, 32, cap))
    while tn % stn != 0:
        stn -= 8
    return max(stn, 8)


def route_sae_forward(x, router_w, enc_w, dec_w, pre_bias, latent_bias, k,
                      aggre="mean", routing="soft", tn=None):
    """x: (B, T, R, H). router_w: (R, H), enc_w: (Lat, H), dec_w: (H, Lat)
    -- all torch nn.Linear weight layouts."""
    if aggre not in ("mean", "sum"):
        raise ValueError(f"Unsupported aggre: {aggre}")
    if routing not in ("soft", "hard"):
        raise ValueError(f"Unsupported routing: {routing}")
    B, T, R, H = x.shape
    Lat = enc_w.shape[0]
    assert 1 <= k <= Lat, "k must be in [1, latent_size]"
    assert R <= _R_PAD
    hard = routing == "hard"
    N = B * T

    budget, vmem_limit = _vmem_budget()
    if tn is None:
        tn = _pick_tn(N, R, H, Lat, hard, budget)
    assert tn % 8 == 0
    stn = _pick_stn(tn, Lat)

    steps = -(-N // tn)
    if steps > 1 and steps % 2 == 1:
        steps += 1          # even grid count: balance across v7x's 2 TCs
    N_pad = steps * tn

    # layer-major layout (R, N, H): every block's last two dims are (tn, H);
    # pad tokens up to a multiple of tn (padded rows are sliced off below).
    xf = jnp.transpose(x.reshape(N, R, H).astype(jnp.float32), (1, 0, 2))
    if N_pad != N:
        xf = jnp.pad(xf, ((0, 0), (0, N_pad - N), (0, 0)))

    wr = jnp.pad(router_w.T.astype(jnp.float32),
                 ((0, 0), (0, _R_PAD - R))).astype(jnp.bfloat16)   # (H, 128)
    we = enc_w.T.astype(jnp.bfloat16)                              # (H, Lat)
    wd = dec_w.T.astype(jnp.bfloat16)                              # (Lat, H)
    pb = pre_bias.reshape(1, H).astype(jnp.float32)
    lb = latent_bias.reshape(1, Lat).astype(jnp.float32)
    # TODO(synk): bf16 activations/outputs would halve HBM traffic on v5e once
    # downstream consumers accept bf16.

    kernel = functools.partial(_route_sae_kernel, aggre=aggre, routing=routing,
                               k=int(k), n_routed=R, stn=stn)

    out_specs, out_shape = [], []
    if hard:
        out_specs.append(pl.BlockSpec((tn, _R_PAD), lambda i: (i, 0)))   # blw
        out_shape.append(jax.ShapeDtypeStruct((N_pad, _R_PAD), jnp.float32))
    out_specs += [
        pl.BlockSpec((tn, H), lambda i: (i, 0)),        # x_routed
        pl.BlockSpec((tn, Lat), lambda i: (i, 0)),      # latents
        pl.BlockSpec((tn, H), lambda i: (i, 0)),        # x_hat
        pl.BlockSpec((tn, _R_PAD), lambda i: (i, 0)),   # router weights
    ]
    out_shape += [
        jax.ShapeDtypeStruct((N_pad, H), jnp.float32),
        jax.ShapeDtypeStruct((N_pad, Lat), jnp.float32),
        jax.ShapeDtypeStruct((N_pad, H), jnp.float32),
        jax.ShapeDtypeStruct((N_pad, _R_PAD), jnp.float32),
    ]

    outs = pl.pallas_call(
        kernel,
        grid=(steps,),
        in_specs=[
            pl.BlockSpec((R, tn, H), lambda i: (0, i, 0)),
            pl.BlockSpec((H, _R_PAD), lambda i: (0, 0)),
            pl.BlockSpec((H, Lat), lambda i: (0, 0)),
            pl.BlockSpec((Lat, H), lambda i: (0, 0)),
            pl.BlockSpec((1, H), lambda i: (0, 0)),
            pl.BlockSpec((1, Lat), lambda i: (0, 0)),
        ],
        out_specs=out_specs,
        out_shape=out_shape,
        compiler_params=pltpu.CompilerParams(
            dimension_semantics=("parallel",),
            vmem_limit_bytes=vmem_limit),
    )(xf, wr, we, wd, pb, lb)

    if hard:
        blw_p, xr, lat, xhat, rw_p = outs
        blw = blw_p[:N, :R]
    else:
        xr, lat, xhat, rw_p = outs
        blw = rw_p[:N, :R]  # soft: batch_layer_weights == router_weights
    rw = rw_p[:N, :R]
    return (
        blw.reshape(B, T, R),
        xr[:N].reshape(B, T, H),
        lat[:N].reshape(B, T, Lat),
        xhat[:N].reshape(B, T, H),
        rw.reshape(B, T, R),
    )


# ----------------------------------------------------------------------------
# Pure-JAX reference (mirrors the PyTorch forward; matmul operands in bf16 to
# match the kernel's MXU precision, accumulation in f32)
# ----------------------------------------------------------------------------
def route_sae_reference(x, router_w, enc_w, dec_w, pre_bias, latent_bias, k,
                        aggre="mean", routing="soft"):
    bf = jnp.bfloat16
    ri = x.mean(axis=2) if aggre == "mean" else x.sum(axis=2)
    logits = jnp.dot(ri.astype(bf), router_w.T.astype(bf),
                     preferred_element_type=jnp.float32)
    rw = jax.nn.softmax(logits, axis=-1)
    if routing == "soft":
        blw = rw
        xr = (x * rw[..., None]).sum(axis=2)
    else:
        idx = jnp.argmax(rw, axis=-1)
        maxw = jnp.max(rw, axis=-1)
        blw = jax.nn.one_hot(idx, rw.shape[-1], dtype=rw.dtype)
        xr = jnp.take_along_axis(x, idx[..., None, None], axis=2)[:, :, 0, :]
        xr = xr * maxw[..., None]
    pre = jnp.dot((xr - pre_bias).astype(bf), enc_w.T.astype(bf),
                  preferred_element_type=jnp.float32) + latent_bias
    vals = jax.lax.top_k(pre, k)[0]
    thr = vals[..., -1:]
    lat = jnp.where(pre >= thr, pre, jnp.zeros_like(pre))
    xhat = jnp.dot(lat.astype(bf), dec_w.T.astype(bf),
                   preferred_element_type=jnp.float32) + pre_bias
    return blw, xr, lat, xhat, rw


# ----------------------------------------------------------------------------
if __name__ == "__main__":
    # module config: hidden_size=128, n_layers=8 -> start=2, end=7 -> R=5,
    # latent_size=256, k=8.  Input: batch=2, max_length=8.
    B, T, H, Lat, K = 2, 8, 128, 256, 8
    n_layers = 8
    R = (n_layers * 3 // 4 + 1) - (n_layers // 4)   # = 5 routed layers

    key = jax.random.PRNGKey(0)
    kx, kr, ke, kp, kl = jax.random.split(key, 5)
    x = jax.random.normal(kx, (B, T, R, H), dtype=jnp.float32)
    router_w = 0.02 * jax.random.normal(kr, (R, H), dtype=jnp.float32)   # nn.Linear(H, R)
    enc_w = 0.02 * jax.random.normal(ke, (Lat, H), dtype=jnp.float32)    # nn.Linear(H, Lat)
    dec_w = enc_w.T                                   # torch init: decoder.weight = encoder.weight.T
    pre_bias = 0.01 * jax.random.normal(kp, (H,), dtype=jnp.float32)
    latent_bias = 0.01 * jax.random.normal(kl, (Lat,), dtype=jnp.float32)

    ok = True
    names = ["batch_layer_weights", "x_routed", "latents", "x_hat", "router_weights"]
    for aggre, routing in (("mean", "soft"), ("sum", "hard")):
        outs = route_sae_forward(x, router_w, enc_w, dec_w, pre_bias,
                                 latent_bias, K, aggre=aggre, routing=routing)
        outs = jax.block_until_ready(outs)
        refs = route_sae_reference(x, router_w, enc_w, dec_w, pre_bias,
                                   latent_bias, K, aggre=aggre, routing=routing)
        for name, o, r in zip(names, outs, refs):
            if o.shape != r.shape:
                ok = False
                print(f"shape mismatch [{aggre}/{routing}] {name}: {o.shape} vs {r.shape}")
            elif not jnp.allclose(o, r, atol=2e-3, rtol=2e-2):
                ok = False
                print(f"value mismatch [{aggre}/{routing}] {name}: "
                      f"max |diff| = {float(jnp.max(jnp.abs(o - r)))}")

    if ok:
        print("KERNEL_OK")
</pallas_src>

<mosaic_0001>
module attributes {stable_mosaic.version = 11 : i64} {
  func.func @_route_sae_kernel(%arg0: i32, %arg1: memref<5x8x128xf32, #tpu.memory_space<vmem>>, %arg2: memref<128x128xbf16, #tpu.memory_space<vmem>>, %arg3: memref<128x256xbf16, #tpu.memory_space<vmem>>, %arg4: memref<256x128xbf16, #tpu.memory_space<vmem>>, %arg5: memref<1x128xf32, #tpu.memory_space<vmem>>, %arg6: memref<1x256xf32, #tpu.memory_space<vmem>>, %arg7: memref<8x128xf32, #tpu.memory_space<vmem>>, %arg8: memref<8x256xf32, #tpu.memory_space<vmem>>, %arg9: memref<8x128xf32, #tpu.memory_space<vmem>>, %arg10: memref<8x128xf32, #tpu.memory_space<vmem>>) attributes {dimension_semantics = [#tpu.dimension_semantics<parallel>], iteration_bounds = array<i64: 2>, scalar_prefetch = 0 : i64, scratch_operands = 0 : i64, tpu.core_type = #tpu.core_type<tc>, window_params = [{transform_indices = @transform_0, window_bounds = array<i64: 5, 8, 128>}, {pipeline_mode = #tpu.pipeline_mode<synchronous>, transform_indices = @transform_1, window_bounds = array<i64: 128, 128>}, {pipeline_mode = #tpu.pipeline_mode<synchronous>, transform_indices = @transform_2, window_bounds = array<i64: 128, 256>}, {pipeline_mode = #tpu.pipeline_mode<synchronous>, transform_indices = @transform_3, window_bounds = array<i64: 256, 128>}, {pipeline_mode = #tpu.pipeline_mode<synchronous>, transform_indices = @transform_4, window_bounds = array<i64: 1, 128>}, {pipeline_mode = #tpu.pipeline_mode<synchronous>, transform_indices = @transform_5, window_bounds = array<i64: 1, 256>}, {transform_indices = @transform_6, window_bounds = array<i64: 8, 128>}, {transform_indices = @transform_7, window_bounds = array<i64: 8, 256>}, {transform_indices = @transform_8, window_bounds = array<i64: 8, 128>}, {transform_indices = @transform_9, window_bounds = array<i64: 8, 128>}]} {
    %c0 = arith.constant 0 : index
    %c0_0 = arith.constant 0 : index
    %c0_1 = arith.constant 0 : index
    %0 = vector.load %arg1[%c0, %c0_0, %c0_1] : memref<5x8x128xf32, #tpu.memory_space<vmem>>, vector<1x8x128xf32>
    %1 = vector.shape_cast %0 : vector<1x8x128xf32> to vector<8x128xf32>
    %c1 = arith.constant 1 : index
    %c0_2 = arith.constant 0 : index
    %c0_3 = arith.constant 0 : index
    %2 = vector.load %arg1[%c1, %c0_2, %c0_3] : memref<5x8x128xf32, #tpu.memory_space<vmem>>, vector<1x8x128xf32>
    %3 = vector.shape_cast %2 : vector<1x8x128xf32> to vector<8x128xf32>
    %4 = arith.addf %1, %3 : vector<8x128xf32>
    %c2 = arith.constant 2 : index
    %c0_4 = arith.constant 0 : index
    %c0_5 = arith.constant 0 : index
    %5 = vector.load %arg1[%c2, %c0_4, %c0_5] : memref<5x8x128xf32, #tpu.memory_space<vmem>>, vector<1x8x128xf32>
    %6 = vector.shape_cast %5 : vector<1x8x128xf32> to vector<8x128xf32>
    %7 = arith.addf %4, %6 : vector<8x128xf32>
    %c3 = arith.constant 3 : index
    %c0_6 = arith.constant 0 : index
    %c0_7 = arith.constant 0 : index
    %8 = vector.load %arg1[%c3, %c0_6, %c0_7] : memref<5x8x128xf32, #tpu.memory_space<vmem>>, vector<1x8x128xf32>
    %9 = vector.shape_cast %8 : vector<1x8x128xf32> to vector<8x128xf32>
    %10 = arith.addf %7, %9 : vector<8x128xf32>
    %c4 = arith.constant 4 : index
    %c0_8 = arith.constant 0 : index
    %c0_9 = arith.constant 0 : index
    %11 = vector.load %arg1[%c4, %c0_8, %c0_9] : memref<5x8x128xf32, #tpu.memory_space<vmem>>, vector<1x8x128xf32>
    %12 = vector.shape_cast %11 : vector<1x8x128xf32> to vector<8x128xf32>
    %13 = arith.addf %10, %12 : vector<8x128xf32>
    %cst = arith.constant 5.000000e+00 : f32
    %14 = vector.broadcast %cst : f32 to vector<8x128xf32>
    %15 = arith.divf %13, %14 : vector<8x128xf32>
    %16 = arith.truncf %15 : vector<8x128xf32> to vector<8x128xbf16>
    %c0_10 = arith.constant 0 : index
    %c0_11 = arith.constant 0 : index
    %17 = vector.load %arg2[%c0_10, %c0_11] : memref<128x128xbf16, #tpu.memory_space<vmem>>, vector<128x128xbf16>
    %cst_12 = arith.constant dense<0.000000e+00> : vector<8x128xf32>
    %18 = tpu.matmul %16, %17, %cst_12 {dimension_numbers = #tpu.dot_dimension_numbers<[1], [0], [0], [1], [0, 0, 1, 1], [], []>} : vector<8x128xbf16>, vector<128x128xbf16>, vector<8x128xf32> -> vector<8x128xf32>
    %19 = tpu.iota {dimensions = array<i32: 1>} : vector<8x128xi32>
    %c5_i32 = arith.constant 5 : i32
    %20 = vector.broadcast %c5_i32 : i32 to vector<8x128xi32>
    %21 = arith.cmpi slt, %19, %20 : vector<8x128xi32>
    %cst_13 = arith.constant 0xFF800000 : f32
    %22 = vector.broadcast %cst_13 : f32 to vector<8x128xf32>
    %23 = arith.select %21, %18, %22 : vector<8x128xi1>, vector<8x128xf32>
    %cst_14 = arith.constant dense<0xFF800000> : vector<8xf32>
    %24 = vector.multi_reduction <maximumf>, %23, %cst_14 [1] : vector<8x128xf32> to vector<8xf32>
    %25 = vector.shape_cast %24 : vector<8xf32> to vector<8x1xf32>
    %26 = vector.broadcast %25 : vector<8x1xf32> to vector<8x128xf32>
    %27 = arith.subf %23, %26 : vector<8x128xf32>
    %28 = math.exp %27 : vector<8x128xf32>
    %cst_15 = arith.constant 0.000000e+00 : f32
    %29 = vector.broadcast %cst_15 : f32 to vector<8x128xf32>
    %30 = arith.select %21, %28, %29 : vector<8x128xi1>, vector<8x128xf32>
    %cst_16 = arith.constant dense<0.000000e+00> : vector<8xf32>
    %31 = vector.multi_reduction <add>, %30, %cst_16 [1] : vector<8x128xf32> to vector<8xf32>
    %32 = vector.shape_cast %31 : vector<8xf32> to vector<8x1xf32>
    %33 = vector.broadcast %32 : vector<8x1xf32> to vector<8x128xf32>
    %34 = arith.divf %30, %33 : vector<8x128xf32>
    %c0_17 = arith.constant 0 : index
    %c0_18 = arith.constant 0 : index
    %35 = vector.load %arg10[%c0_17, %c0_18] : memref<8x128xf32, #tpu.memory_space<vmem>>, vector<8x128xf32>
    tpu.vector_store %arg10[%c0_17, %c0_18], %34 {strides = array<i32>} : memref<8x128xf32, #tpu.memory_space<vmem>>, vector<8x128xf32>,
    %c0_19 = arith.constant 0 : index
    %c0_20 = arith.constant 0 : index
    %c0_21 = arith.constant 0 : index
    %36 = vector.load %arg1[%c0_19, %c0_20, %c0_21] : memref<5x8x128xf32, #tpu.memory_space<vmem>>, vector<1x8x128xf32>
    %37 = vector.shape_cast %36 : vector<1x8x128xf32> to vector<8x128xf32>
    %38 = vector.extract_strided_slice %34 {offsets = [0, 0], sizes = [8, 1], strides = [1, 1]} : vector<8x128xf32> to vector<8x1xf32>
    %39 = vector.broadcast %38 : vector<8x1xf32> to vector<8x128xf32>
    %40 = arith.mulf %37, %39 : vector<8x128xf32>
    %c1_22 = arith.constant 1 : index
    %c0_23 = arith.constant 0 : index
    %c0_24 = arith.constant 0 : index
    %41 = vector.load %arg1[%c1_22, %c0_23, %c0_24] : memref<5x8x128xf32, #tpu.memory_space<vmem>>, vector<1x8x128xf32>
    %42 = vector.shape_cast %41 : vector<1x8x128xf32> to vector<8x128xf32>
    %43 = vector.extract_strided_slice %34 {offsets = [0, 1], sizes = [8, 1], strides = [1, 1]} : vector<8x128xf32> to vector<8x1xf32>
    %44 = vector.broadcast %43 : vector<8x1xf32> to vector<8x128xf32>
    %45 = arith.mulf %42, %44 : vector<8x128xf32>
    %46 = arith.addf %40, %45 : vector<8x128xf32>
    %c2_25 = arith.constant 2 : index
    %c0_26 = arith.constant 0 : index
    %c0_27 = arith.constant 0 : index
    %47 = vector.load %arg1[%c2_25, %c0_26, %c0_27] : memref<5x8x128xf32, #tpu.memory_space<vmem>>, vector<1x8x128xf32>
    %48 = vector.shape_cast %47 : vector<1x8x128xf32> to vector<8x128xf32>
    %49 = vector.extract_strided_slice %34 {offsets = [0, 2], sizes = [8, 1], strides = [1, 1]} : vector<8x128xf32> to vector<8x1xf32>
    %50 = vector.broadcast %49 : vector<8x1xf32> to vector<8x128xf32>
    %51 = arith.mulf %48, %50 : vector<8x128xf32>
    %52 = arith.addf %46, %51 : vector<8x128xf32>
    %c3_28 = arith.constant 3 : index
    %c0_29 = arith.constant 0 : index
    %c0_30 = arith.constant 0 : index
    %53 = vector.load %arg1[%c3_28, %c0_29, %c0_30] : memref<5x8x128xf32, #tpu.memory_space<vmem>>, vector<1x8x128xf32>
    %54 = vector.shape_cast %53 : vector<1x8x128xf32> to vector<8x128xf32>
    %55 = vector.extract_strided_slice %34 {offsets = [0, 3], sizes = [8, 1], strides = [1, 1]} : vector<8x128xf32> to vector<8x1xf32>
    %56 = vector.broadcast %55 : vector<8x1xf32> to vector<8x128xf32>
    %57 = arith.mulf %54, %56 : vector<8x128xf32>
    %58 = arith.addf %52, %57 : vector<8x128xf32>
    %c4_31 = arith.constant 4 : index
    %c0_32 = arith.constant 0 : index
    %c0_33 = arith.constant 0 : index
    %59 = vector.load %arg1[%c4_31, %c0_32, %c0_33] : memref<5x8x128xf32, #tpu.memory_space<vmem>>, vector<1x8x128xf32>
    %60 = vector.shape_cast %59 : vector<1x8x128xf32> to vector<8x128xf32>
    %61 = vector.extract_strided_slice %34 {offsets = [0, 4], sizes = [8, 1], strides = [1, 1]} : vector<8x128xf32> to vector<8x1xf32>
    %62 = vector.broadcast %61 : vector<8x1xf32> to vector<8x128xf32>
    %63 = arith.mulf %60, %62 : vector<8x128xf32>
    %64 = arith.addf %58, %63 : vector<8x128xf32>
    %c0_34 = arith.constant 0 : index
    %c0_35 = arith.constant 0 : index
    %65 = vector.load %arg7[%c0_34, %c0_35] : memref<8x128xf32, #tpu.memory_space<vmem>>, vector<8x128xf32>
    tpu.vector_store %arg7[%c0_34, %c0_35], %64 {strides = array<i32>} : memref<8x128xf32, #tpu.memory_space<vmem>>, vector<8x128xf32>,
    %c0_36 = arith.constant 0 : index
    %c0_37 = arith.constant 0 : index
    %66 = vector.load %arg5[%c0_36, %c0_37] : memref<1x128xf32, #tpu.memory_space<vmem>>, vector<1x128xf32>
    %c0_38 = arith.constant 0 : index
    %c0_39 = arith.constant 0 : index
    %67 = vector.load %arg6[%c0_38, %c0_39] : memref<1x256xf32, #tpu.memory_space<vmem>>, vector<1x256xf32>
    %c0_i32 = arith.constant 0 : i32
    %c1_i32 = arith.constant 1 : i32
    %68 = arith.muli %c0_i32, %c1_i32 : i32
    %c0_i32_40 = arith.constant 0 : i32
    %69 = arith.addi %c0_i32_40, %68 : i32
    %c8_i32 = arith.constant 8 : i32
    %70 = arith.muli %69, %c8_i32 : i32
    %71 = tpu.assume_multiple %70, 8 : i32
    %72 = arith.index_cast %71 : i32 to index
    %c0_41 = arith.constant 0 : index
    %73 = vector.load %arg7[%72, %c0_41] : memref<8x128xf32, #tpu.memory_space<vmem>>, vector<8x128xf32>
    %74 = vector.broadcast %66 : vector<1x128xf32> to vector<8x128xf32>
    %75 = arith.subf %73, %74 : vector<8x128xf32>
    %76 = arith.truncf %75 : vector<8x128xf32> to vector<8x128xbf16>
    %c0_42 = arith.constant 0 : index
    %c0_43 = arith.constant 0 : index
    %77 = vector.load %arg3[%c0_42, %c0_43] : memref<128x256xbf16, #tpu.memory_space<vmem>>, vector<128x256xbf16>
    %cst_44 = arith.constant dense<0.000000e+00> : vector<8x256xf32>
    %78 = tpu.matmul %76, %77, %cst_44 {dimension_numbers = #tpu.dot_dimension_numbers<[1], [0], [0], [1], [0, 0, 1, 1], [], []>} : vector<8x128xbf16>, vector<128x256xbf16>, vector<8x256xf32> -> vector<8x256xf32>
    %79 = vector.broadcast %67 : vector<1x256xf32> to vector<8x256xf32>
    %80 = arith.addf %78, %79 : vector<8x256xf32>
    %cst_45 = arith.constant 0xFF800000 : f32
    %81 = vector.broadcast %cst_45 : f32 to vector<8x1xf32>
    %cst_46 = arith.constant 8.000000e+00 : f32
    %82 = vector.broadcast %cst_46 : f32 to vector<8x1xf32>
    %cst_47 = arith.constant 0.000000e+00 : f32
    %83 = vector.broadcast %cst_47 : f32 to vector<8x1xf32>
    %84 = arith.cmpf ogt, %82, %83 : vector<8x1xf32>
    %cst_48 = arith.constant dense<0xFF800000> : vector<8xf32>
    %85 = vector.multi_reduction <maximumf>, %80, %cst_48 [1] : vector<8x256xf32> to vector<8xf32>
    %86 = vector.shape_cast %85 : vector<8xf32> to vector<8x1xf32>
    %87 = vector.broadcast %86 : vector<8x1xf32> to vector<8x256xf32>
    %88 = arith.cmpf oeq, %80, %87 : vector<8x256xf32>
    %89 = vector.broadcast %84 : vector<8x1xi1> to vector<8x256xi1>
    %90 = arith.andi %88, %89 : vector<8x256xi1>
    %91 = arith.select %84, %86, %81 : vector<8x1xi1>, vector<8x1xf32>
    %92 = arith.extui %90 : vector<8x256xi1> to vector<8x256xi32>
    %93 = arith.sitofp %92 : vector<8x256xi32> to vector<8x256xf32>
    %cst_49 = arith.constant dense<0.000000e+00> : vector<8xf32>
    %94 = vector.multi_reduction <add>, %93, %cst_49 [1] : vector<8x256xf32> to vector<8xf32>
    %95 = vector.shape_cast %94 : vector<8xf32> to vector<8x1xf32>
    %96 = arith.subf %82, %95 : vector<8x1xf32>
    %cst_50 = arith.constant 0xFF800000 : f32
    %97 = vector.broadcast %cst_50 : f32 to vector<8x256xf32>
    %98 = arith.select %90, %97, %80 : vector<8x256xi1>, vector<8x256xf32>
    %cst_51 = arith.constant 0.000000e+00 : f32
    %99 = vector.broadcast %cst_51 : f32 to vector<8x1xf32>
    %100 = arith.cmpf ogt, %96, %99 : vector<8x1xf32>
    %cst_52 = arith.constant dense<0xFF800000> : vector<8xf32>
    %101 = vector.multi_reduction <maximumf>, %98, %cst_52 [1] : vector<8x256xf32> to vector<8xf32>
    %102 = vector.shape_cast %101 : vector<8xf32> to vector<8x1xf32>
    %103 = vector.broadcast %102 : vector<8x1xf32> to vector<8x256xf32>
    %104 = arith.cmpf oeq, %98, %103 : vector<8x256xf32>
    %105 = vector.broadcast %100 : vector<8x1xi1> to vector<8x256xi1>
    %106 = arith.andi %104, %105 : vector<8x256xi1>
    %107 = arith.select %100, %102, %91 : vector<8x1xi1>, vector<8x1xf32>
    %108 = arith.extui %106 : vector<8x256xi1> to vector<8x256xi32>
    %109 = arith.sitofp %108 : vector<8x256xi32> to vector<8x256xf32>
    %cst_53 = arith.constant dense<0.000000e+00> : vector<8xf32>
    %110 = vector.multi_reduction <add>, %109, %cst_53 [1] : vector<8x256xf32> to vector<8xf32>
    %111 = vector.shape_cast %110 : vector<8xf32> to vector<8x1xf32>
    %112 = arith.subf %96, %111 : vector<8x1xf32>
    %cst_54 = arith.constant 0xFF800000 : f32
    %113 = vector.broadcast %cst_54 : f32 to vector<8x256xf32>
    %114 = arith.select %106, %113, %98 : vector<8x256xi1>, vector<8x256xf32>
    %cst_55 = arith.constant 0.000000e+00 : f32
    %115 = vector.broadcast %cst_55 : f32 to vector<8x1xf32>
    %116 = arith.cmpf ogt, %112, %115 : vector<8x1xf32>
    %cst_56 = arith.constant dense<0xFF800000> : vector<8xf32>
    %117 = vector.multi_reduction <maximumf>, %114, %cst_56 [1] : vector<8x256xf32> to vector<8xf32>
    %118 = vector.shape_cast %117 : vector<8xf32> to vector<8x1xf32>
    %119 = vector.broadcast %118 : vector<8x1xf32> to vector<8x256xf32>
    %120 = arith.cmpf oeq, %114, %119 : vector<8x256xf32>
    %121 = vector.broadcast %116 : vector<8x1xi1> to vector<8x256xi1>
    %122 = arith.andi %120, %121 : vector<8x256xi1>
    %123 = arith.select %116, %118, %107 : vector<8x1xi1>, vector<8x1xf32>
    %124 = arith.extui %122 : vector<8x256xi1> to vector<8x256xi32>
    %125 = arith.sitofp %124 : vector<8x256xi32> to vector<8x256xf32>
    %cst_57 = arith.constant dense<0.000000e+00> : vector<8xf32>
    %126 = vector.multi_reduction <add>, %125, %cst_57 [1] : vector<8x256xf32> to vector<8xf32>
    %127 = vector.shape_cast %126 : vector<8xf32> to vector<8x1xf32>
    %128 = arith.subf %112, %127 : vector<8x1xf32>
    %cst_58 = arith.constant 0xFF800000 : f32
    %129 = vector.broadcast %cst_58 : f32 to vector<8x256xf32>
    %130 = arith.select %122, %129, %114 : vector<8x256xi1>, vector<8x256xf32>
    %cst_59 = arith.constant 0.000000e+00 : f32
    %131 = vector.broadcast %cst_59 : f32 to vector<8x1xf32>
    %132 = arith.cmpf ogt, %128, %131 : vector<8x1xf32>
    %cst_60 = arith.constant dense<0xFF800000> : vector<8xf32>
    %133 = vector.multi_reduction <maximumf>, %130, %cst_60 [1] : vector<8x256xf32> to vector<8xf32>
    %134 = vector.shape_cast %133 : vector<8xf32> to vector<8x1xf32>
    %135 = vector.broadcast %134 : vector<8x1xf32> to vector<8x256xf32>
    %136 = arith.cmpf oeq, %130, %135 : vector<8x256xf32>
    %137 = vector.broadcast %132 : vector<8x1xi1> to vector<8x256xi1>
    %138 = arith.andi %136, %137 : vector<8x256xi1>
    %139 = arith.select %132, %134, %123 : vector<8x1xi1>, vector<8x1xf32>
    %140 = arith.extui %138 : vector<8x256xi1> to vector<8x256xi32>
    %141 = arith.sitofp %140 : vector<8x256xi32> to vector<8x256xf32>
    %cst_61 = arith.constant dense<0.000000e+00> : vector<8xf32>
    %142 = vector.multi_reduction <add>, %141, %cst_61 [1] : vector<8x256xf32> to vector<8xf32>
    %143 = vector.shape_cast %142 : vector<8xf32> to vector<8x1xf32>
    %144 = arith.subf %128, %143 : vector<8x1xf32>
    %cst_62 = arith.constant 0xFF800000 : f32
    %145 = vector.broadcast %cst_62 : f32 to vector<8x256xf32>
    %146 = arith.select %138, %145, %130 : vector<8x256xi1>, vector<8x256xf32>
    %cst_63 = arith.constant 0.000000e+00 : f32
    %147 = vector.broadcast %cst_63 : f32 to vector<8x1xf32>
    %148 = arith.cmpf ogt, %144, %147 : vector<8x1xf32>
    %cst_64 = arith.constant dense<0xFF800000> : vector<8xf32>
    %149 = vector.multi_reduction <maximumf>, %146, %cst_64 [1] : vector<8x256xf32> to vector<8xf32>
    %150 = vector.shape_cast %149 : vector<8xf32> to vector<8x1xf32>
    %151 = vector.broadcast %150 : vector<8x1xf32> to vector<8x256xf32>
    %152 = arith.cmpf oeq, %146, %151 : vector<8x256xf32>
    %153 = vector.broadcast %148 : vector<8x1xi1> to vector<8x256xi1>
    %154 = arith.andi %152, %153 : vector<8x256xi1>
    %155 = arith.select %148, %150, %139 : vector<8x1xi1>, vector<8x1xf32>
    %156 = arith.extui %154 : vector<8x256xi1> to vector<8x256xi32>
    %157 = arith.sitofp %156 : vector<8x256xi32> to vector<8x256xf32>
    %cst_65 = arith.constant dense<0.000000e+00> : vector<8xf32>
    %158 = vector.multi_reduction <add>, %157, %cst_65 [1] : vector<8x256xf32> to vector<8xf32>
    %159 = vector.shape_cast %158 : vector<8xf32> to vector<8x1xf32>
    %160 = arith.subf %144, %159 : vector<8x1xf32>
    %cst_66 = arith.constant 0xFF800000 : f32
    %161 = vector.broadcast %cst_66 : f32 to vector<8x256xf32>
    %162 = arith.select %154, %161, %146 : vector<8x256xi1>, vector<8x256xf32>
    %cst_67 = arith.constant 0.000000e+00 : f32
    %163 = vector.broadcast %cst_67 : f32 to vector<8x1xf32>
    %164 = arith.cmpf ogt, %160, %163 : vector<8x1xf32>
    %cst_68 = arith.constant dense<0xFF800000> : vector<8xf32>
    %165 = vector.multi_reduction <maximumf>, %162, %cst_68 [1] : vector<8x256xf32> to vector<8xf32>
    %166 = vector.shape_cast %165 : vector<8xf32> to vector<8x1xf32>
    %167 = vector.broadcast %166 : vector<8x1xf32> to vector<8x256xf32>
    %168 = arith.cmpf oeq, %162, %167 : vector<8x256xf32>
    %169 = vector.broadcast %164 : vector<8x1xi1> to vector<8x256xi1>
    %170 = arith.andi %168, %169 : vector<8x256xi1>
    %171 = arith.select %164, %166, %155 : vector<8x1xi1>, vector<8x1xf32>
    %172 = arith.extui %170 : vector<8x256xi1> to vector<8x256xi32>
    %173 = arith.sitofp %172 : vector<8x256xi32> to vector<8x256xf32>
    %cst_69 = arith.constant dense<0.000000e+00> : vector<8xf32>
    %174 = vector.multi_reduction <add>, %173, %cst_69 [1] : vector<8x256xf32> to vector<8xf32>
    %175 = vector.shape_cast %174 : vector<8xf32> to vector<8x1xf32>
    %176 = arith.subf %160, %175 : vector<8x1xf32>
    %cst_70 = arith.constant 0xFF800000 : f32
    %177 = vector.broadcast %cst_70 : f32 to vector<8x256xf32>
    %178 = arith.select %170, %177, %162 : vector<8x256xi1>, vector<8x256xf32>
    %cst_71 = arith.constant 0.000000e+00 : f32
    %179 = vector.broadcast %cst_71 : f32 to vector<8x1xf32>
    %180 = arith.cmpf ogt, %176, %179 : vector<8x1xf32>
    %cst_72 = arith.constant dense<0xFF800000> : vector<8xf32>
    %181 = vector.multi_reduction <maximumf>, %178, %cst_72 [1] : vector<8x256xf32> to vector<8xf32>
    %182 = vector.shape_cast %181 : vector<8xf32> to vector<8x1xf32>
    %183 = vector.broadcast %182 : vector<8x1xf32> to vector<8x256xf32>
    %184 = arith.cmpf oeq, %178, %183 : vector<8x256xf32>
    %185 = vector.broadcast %180 : vector<8x1xi1> to vector<8x256xi1>
    %186 = arith.andi %184, %185 : vector<8x256xi1>
    %187 = arith.select %180, %182, %171 : vector<8x1xi1>, vector<8x1xf32>
    %188 = arith.extui %186 : vector<8x256xi1> to vector<8x256xi32>
    %189 = arith.sitofp %188 : vector<8x256xi32> to vector<8x256xf32>
    %cst_73 = arith.constant dense<0.000000e+00> : vector<8xf32>
    %190 = vector.multi_reduction <add>, %189, %cst_73 [1] : vector<8x256xf32> to vector<8xf32>
    %191 = vector.shape_cast %190 : vector<8xf32> to vector<8x1xf32>
    %192 = arith.subf %176, %191 : vector<8x1xf32>
    %cst_74 = arith.constant 0xFF800000 : f32
    %193 = vector.broadcast %cst_74 : f32 to vector<8x256xf32>
    %194 = arith.select %186, %193, %178 : vector<8x256xi1>, vector<8x256xf32>
    %cst_75 = arith.constant 0.000000e+00 : f32
    %195 = vector.broadcast %cst_75 : f32 to vector<8x1xf32>
    %196 = arith.cmpf ogt, %192, %195 : vector<8x1xf32>
    %cst_76 = arith.constant dense<0xFF800000> : vector<8xf32>
    %197 = vector.multi_reduction <maximumf>, %194, %cst_76 [1] : vector<8x256xf32> to vector<8xf32>
    %198 = vector.shape_cast %197 : vector<8xf32> to vector<8x1xf32>
    %199 = arith.select %196, %198, %187 : vector<8x1xi1>, vector<8x1xf32>
    %200 = vector.broadcast %199 : vector<8x1xf32> to vector<8x256xf32>
    %201 = arith.cmpf oge, %80, %200 : vector<8x256xf32>
    %cst_77 = arith.constant 0.000000e+00 : f32
    %202 = vector.broadcast %cst_77 : f32 to vector<8x256xf32>
    %203 = arith.select %201, %80, %202 : vector<8x256xi1>, vector<8x256xf32>
    %204 = arith.index_cast %71 : i32 to index
    %c0_78 = arith.constant 0 : index
    %205 = vector.load %arg8[%204, %c0_78] : memref<8x256xf32, #tpu.memory_space<vmem>>, vector<8x256xf32>
    tpu.vector_store %arg8[%204, %c0_78], %203 {strides = array<i32>} : memref<8x256xf32, #tpu.memory_space<vmem>>, vector<8x256xf32>,
    %206 = arith.truncf %203 : vector<8x256xf32> to vector<8x256xbf16>
    %c0_79 = arith.constant 0 : index
    %c0_80 = arith.constant 0 : index
    %207 = vector.load %arg4[%c0_79, %c0_80] : memref<256x128xbf16, #tpu.memory_space<vmem>>, vector<256x128xbf16>
    %cst_81 = arith.constant dense<0.000000e+00> : vector<8x128xf32>
    %208 = tpu.matmul %206, %207, %cst_81 {dimension_numbers = #tpu.dot_dimension_numbers<[1], [0], [0], [1], [0, 0, 1, 1], [], []>} : vector<8x256xbf16>, vector<256x128xbf16>, vector<8x128xf32> -> vector<8x128xf32>
    %209 = vector.broadcast %66 : vector<1x128xf32> to vector<8x128xf32>
    %210 = arith.addf %208, %209 : vector<8x128xf32>
    %211 = arith.index_cast %71 : i32 to index
    %c0_82 = arith.constant 0 : index
    %212 = vector.load %arg9[%211, %c0_82] : memref<8x128xf32, #tpu.memory_space<vmem>>, vector<8x128xf32>
    tpu.vector_store %arg9[%211, %c0_82], %210 {strides = array<i32>} : memref<8x128xf32, #tpu.memory_space<vmem>>, vector<8x128xf32>,
    %c1_i32_83 = arith.constant 1 : i32
    return
  }
  func.func @transform_0(%arg0: i32) -> (i32, i32, i32) {
    %c0_i32 = arith.constant 0 : i32
    %c0_i32_0 = arith.constant 0 : i32
    %c0_i32_1 = arith.constant 0 : i32
    return %c0_i32, %arg0, %c0_i32_0 : i32, i32, i32
  }
  func.func @transform_1(%arg0: i32) -> (i32, i32) {
    %c0_i32 = arith.constant 0 : i32
    %c0_i32_0 = arith.constant 0 : i32
    %c0_i32_1 = arith.constant 0 : i32
    return %c0_i32, %c0_i32_0 : i32, i32
  }
  func.func @transform_2(%arg0: i32) -> (i32, i32) {
    %c0_i32 = arith.constant 0 : i32
    %c0_i32_0 = arith.constant 0 : i32
    %c0_i32_1 = arith.constant 0 : i32
    return %c0_i32, %c0_i32_0 : i32, i32
  }
  func.func @transform_3(%arg0: i32) -> (i32, i32) {
    %c0_i32 = arith.constant 0 : i32
    %c0_i32_0 = arith.constant 0 : i32
    %c0_i32_1 = arith.constant 0 : i32
    return %c0_i32, %c0_i32_0 : i32, i32
  }
  func.func @transform_4(%arg0: i32) -> (i32, i32) {
    %c0_i32 = arith.constant 0 : i32
    %c0_i32_0 = arith.constant 0 : i32
    %c0_i32_1 = arith.constant 0 : i32
    return %c0_i32, %c0_i32_0 : i32, i32
  }
  func.func @transform_5(%arg0: i32) -> (i32, i32) {
    %c0_i32 = arith.constant 0 : i32
    %c0_i32_0 = arith.constant 0 : i32
    %c0_i32_1 = arith.constant 0 : i32
    return %c0_i32, %c0_i32_0 : i32, i32
  }
  func.func @transform_6(%arg0: i32) -> (i32, i32) {
    %c0_i32 = arith.constant 0 : i32
    %c0_i32_0 = arith.constant 0 : i32
    return %arg0, %c0_i32 : i32, i32
  }
  func.func @transform_7(%arg0: i32) -> (i32, i32) {
    %c0_i32 = arith.constant 0 : i32
    %c0_i32_0 = arith.constant 0 : i32
    return %arg0, %c0_i32 : i32, i32
  }
  func.func @transform_8(%arg0: i32) -> (i32, i32) {
    %c0_i32 = arith.constant 0 : i32
    %c0_i32_0 = arith.constant 0 : i32
    return %arg0, %c0_i32 : i32, i32
  }
  func.func @transform_9(%arg0: i32) -> (i32, i32) {
    %c0_i32 = arith.constant 0 : i32
    %c0_i32_0 = arith.constant 0 : i32
    return %arg0, %c0_i32 : i32, i32
  }
}

</mosaic_0001>

<bundles_post_ra>
// kernel: tpu_custom_call.1
= control target key start
LH: loop header
LB: loop body
LE: loop exit
PB: predicated region body
PF: predicated region fallthrough
CT: control target
= control target key end

     0   :  { %s2353_s0 = inlined_call_operand.hbm [shape: f32[5,16,128], index: 0, kind: input, shape index: {}]   ;;  %s2354_s1 = inlined_call_operand.hbm [shape: bf16[128,128], index: 1, kind: input, shape index: {}]   ;;  %s2355_s2 = inlined_call_operand.hbm [shape: bf16[128,256], index: 2, kind: input, shape index: {}]   ;;  %s2356_s3 = inlined_call_operand.hbm [shape: bf16[256,128], index: 3, kind: input, shape index: {}]   ;;  %s2357_s4 = inlined_call_operand.vmem [shape: f32[1,128], index: 4, kind: input, shape index: {}]   ;;  %s2358_s5 = inlined_call_operand.vmem [shape: f32[1,256], index: 5, kind: input, shape index: {}]   ;;  %s2359_s6 = inlined_call_operand.hbm [shape: f32[16,128], index: 6, kind: output, shape index: {0}]   ;;  %s2360_s7 = inlined_call_operand.hbm [shape: f32[16,256], index: 7, kind: output, shape index: {1}]   ;;  %s2361_s8 = inlined_call_operand.hbm [shape: f32[16,128], index: 8, kind: output, shape index: {2}]   ;;  %s2362_s9 = inlined_call_operand.hbm [shape: f32[16,128], index: 9, kind: output, shape index: {3}]  }
   0x1   :  { %2369 = sst [smem:[#allocation24_spill]] %s2354_s1 }
   0x2   :  { %2370 = sst [smem:[#allocation25_spill]] %s2355_s2 }
   0x3   :  { %2371 = sst [smem:[#allocation26_spill]] %s2356_s3 }
   0x4   :  { %15 = vsyncpa [#allocation3], 0 }
   0x5   :  { %17 = vsyncpa [#allocation3 + $0x1], 0 }
   0x6   :  { %18 = vsyncpa [#allocation6], 0 }
   0x7   :  { %19 = vsyncpa [#allocation9], 0 }
   0x8   :  { %20 = vsyncpa [#allocation4], 0 }
   0x9   :  { %22 = vsyncpa [#allocation4 + $0x1], 0 }
   0xa   :  { %23 = vsyncpa [#allocation12], 0 }
   0xb   :  { %25 = vsyncpa [#allocation12 + $0x1], 0 }
   0xc   :  { %26 = vsyncpa [#allocation15], 0 }
   0xd   :  { %28 = vsyncpa [#allocation15 + $0x1], 0  ;;  %s2041_s30 = smov 0   ;;  %s2043_s10 = smov 0  }
   0xe   :  { %s2045_s11 = smov 0   ;;  %s2047_s12 = smov 0  }
   0xf LB: > { %2372 = sst [smem:[#allocation22_spill]] %s1970_s11  ;;  %s2062_s13 = sadd.s32 4294967295, %s1974_s12   ;;  %s1974_s12 = sphi %s2047_s12, %s2395_s12   ;;  %s1970_s11 = sphi %s2045_s11, %s2392_s11   ;;  %s1966_s10 = sphi %s2043_s10, %s2394_s10   ;;  %s1962_s30 = sphi %s2041_s30, %s2393_s30  }
  0x10   : > { %s2363_s14 = sadd.s32 4294967294, %s1974_s12   ;;  %p54_p0 = scmp.ne.s32.totalorder %s1966_s10, %s1962_s30 }
  0x11   : > { %p55_p1 = scmp.eq.s32.totalorder %s2062_s13, 0  ;;  %p183_p2 = scmp.eq.s32.totalorder %s2062_s13, 1 }
  0x12   : > { %p189_p3 = scmp.eq.s32.totalorder %s2363_s14, 1  ;;  %p1316_p5 = scmp.ge.s32.totalorder %s1974_s12, 1 }
  0x13   : > { %p2073_p4 = por %p55_p1, %p54_p0  ;;  %p274_p7 = scmp.lt.s32.totalorder %s1974_s12, 3 }
  0x14   : > { %p2078_p6 = por %p189_p3, %p54_p0  ;;  %s2375_s1 = sld [smem:[#allocation24_spill]] }
  0x15   : > { %p2086_p8 = pnand %p1316_p5, %p274_p7  ;;  %s1976_s21 = smov [#allocation5]  }
  0x16   : > { %s287_s22 = sshll.u32 %s1976_s21, 4  ;;  %s2378_s2 = sld [smem:[#allocation25_spill]]  ;;  %s288_s22 = int_to_ptr.vmem [resolvable:$true] %s287_s22 }
  0x17   : > { %p1594_p9 = pneg %p2086_p8  ;;  %s1977_s27 = smov 64  }
  0x18   : > { %s1978_s28 = smov 4   ;;  %s1979_s29 = smov [#allocation7]  }
  0x19   : > { %p2094_p10 = pnand %p1594_p9, %p55_p1  ;;  %s301_s17 = sshll.u32 %s1979_s29, 4  ;;  %s302_s17 = int_to_ptr.vmem [resolvable:$true] %s301_s17 }
  0x1a   : > { %s285_s19 = sshll.u32 %s2375_s1, 4  ;;  %s2364_s18 = smov 128   ;;  %s286_s19 = int_to_ptr.hbm [resolvable:$true] %s285_s19 }
  0x1b   : > { %1597 = dma.hbm_to_vmem [thread:$0]  (!%p2094_p10), %s286_s19, 1024, %s288_s22, [#allocation6], %s1977_s27, %s1977_s27, %s1978_s28  }
  0x1c   : > { %s299_s26 = sshll.u32 %s2378_s2, 4  ;;  %s2365_s21 = smov 8   ;;  %s300_s26 = int_to_ptr.hbm [resolvable:$true] %s299_s26 }
  0x1d   : > { %1600 = dma.hbm_to_vmem [thread:$0]  (!%p2094_p10), %s300_s26, 2048, %s302_s17, [#allocation6], %s2364_s18, %s2364_s18, %s2365_s21  }
  0x1e   : > { %s2379_s3 = sld [smem:[#allocation26_spill]]  ;;  %s1982_s22 = smov [#allocation8]  }
  0x1f   : > { %s315_s29 = sshll.u32 %s1982_s22, 4  ;;  %s2115_s14 = sadd.s32 1, %s1974_s12   ;;  %s316_s29 = int_to_ptr.vmem [resolvable:$true] %s315_s29 }
  0x20   : > { %s38_s1 = ssub.s32 %s1974_s12, %s2115_s14  ;;  %s41_s2 = sadd.s32 1, %s1970_s11 }
  0x21   : > { %p39_p12 = scmp.eq.s32.totalorder %s38_s1, 0  ;;  %p48_p13 = scmp.ne.s32.totalorder %s1970_s11, %s1966_s10 }
  0x22   : > { %p49_p0 = scmp.eq.s32.totalorder %s1974_s12, 0  ;;  %p1624_p3 = scmp.lt.s32.totalorder %s1974_s12, 2 }
  0x23   : > { %s2125_s26 = scalar_select %p39_p12, %s1970_s11, %s41_s2  }
  0x24   : > { %s313_s19 = sshll.u32 %s2379_s3, 4  ;;  %p50_p5 = por %p49_p0, %p48_p13  ;;  %s314_s19 = int_to_ptr.hbm [resolvable:$true] %s313_s19 }
  0x25   : > { %1603 = dma.hbm_to_vmem [thread:$0]  (!%p2094_p10), %s314_s19, 2048, %s316_s29, [#allocation9], %s1977_s27, %s1977_s27, %s1978_s28  }
  0x26   : > { %2380 = sst [smem:[#allocation23_spill]] %s2125_s26  ;;  %p2129_p7 = por %p183_p2, %p48_p13 }
  0x27   : > { %s335_s24 = sand.u32 1, %s1970_s11   ;;  %s1321_s23 = sshll.u32 %s1974_s12, 3 }
  0x28   : > { %s1570_s27 = smul.u32 40, %s335_s24  ;;  %s343_s19 = scalar_lea.hbm %s2353_s0, %s1321_s23 }
  0x29   : > { %p2138_p9 = pnand %p1624_p3, %p50_p5  ;;  %s344_s2 = sshll.u32 %s343_s19, 4  ;;  %s345_s2 = int_to_ptr.hbm [resolvable:$true] %s344_s2 }
  0x2a   : > { %s339_s22 = scalar_lea.vmem [#allocation2], %s1570_s27  ;;  %s336_s18 = scalar_lea.sflag [#allocation3], %s335_s24 }
  0x2b   : > { %s346_s29 = sshll.u32 %s339_s22, 4  ;;  %s1778_s21 = sshra.s32 %s345_s2, 4  ;;  %s347_s29 = int_to_ptr.vmem [resolvable:$true] %s346_s29  ;;  %s1779_s21 = int_to_ptr.hbm [resolvable:$true] %s1778_s21 }
  0x2c   : > { %s1780_s3 = scalar_lea.hbm %s1779_s21, 40  ;;  %p1782_p10 = pneg %p2138_p9 }
  0x2d   : > { %p1781_p2 = scmp.ne.s32.totalorder %s1779_s21, %s1780_s3  ;;  %s1785_s25 = scalar_lea.hbm %s2353_s0, 80 }
  0x2e   : > { %p1786_p0 = scmp.lt.s32.totalorder %s1779_s21, %s2353_s0  ;;  %p1787_p3 = scmp.lt.s32.totalorder %s1785_s25, %s1780_s3 }
  0x2f   : > { %p1783_p12 = pnand %p1782_p10, %p1781_p2 }
  0x30   : > { %p1788_p5 = por %p1787_p3, %p1786_p0 }
  0x31   : > { %p1784_p13 = pneg %p1783_p12 }
  0x33   : > { %p1789_p11 = pnand %p1788_p5, %p1784_p13 }
  0x35   : > { %1792 = shalt.err (!%p1789_p11)
}
  0x36   : > { %s1983_s24 = smov 256   ;;  %s2383_s27 = smov 8  }
  0x37   : > { %s2384_s19 = smov 128   ;;  %358 = sbr.rel (%p2086_p8) target bundleno = 1889 (0x761), region = 44 }
  0x38   : > { %1607 = dma.hbm_to_vmem [thread:$0]  (!%p2138_p9), %s345_s2, 640, %s347_s29, %s336_s18, %s1983_s24, %s2384_s19, %s2383_s27  }
  0x39   : > { %s2157_s22 = sand.u32 (!%p2086_p8), 1, %s1966_s10  }
  0x3a   : > { %s1571_s11 = smul.u32 (!%p2086_p8), 40, %s2157_s22  ;;  %s361_s3 = scalar_lea.sflag (!%p2086_p8), [#allocation3], %s2157_s22 }
  0x3c   : > { %s2161_s21 = scalar_lea.vmem [#allocation2], %s1571_s11 }
  0x3d   : > { %1937 = dma.done.wait (%p2073_p4), %s361_s3, 640  }
  0x3e   : > { %1939 = vsyncadd (%p2073_p4), %s361_s3, 4294966656 }
  0x3f   : > { %1941 = dma.done.wait (%p55_p1), [#allocation6], 3072  }
  0x40   : > { %1943 = vsyncadd (%p55_p1), [#allocation6], 4294964224 }
  0x41   : > { %1945 = dma.done.wait (%p55_p1), [#allocation9], 2048  }
  0x42   : > { %1947 = vsyncadd (%p55_p1), [#allocation9], 4294965248  ;;  %v1984_v0 = vmov 5.0   ;;  %v1536_v1 = vld [vmem:[#allocation5 + $0x38] sm:$0xff]  ;;  %v1535_v2 = vld [vmem:[#allocation5 + $0x30] sm:$0xff]  ;;  %v529_v26 = vlaneseq  ;;  %v1985_v36 = vmov 4  }
  0x43   : > { %1682 = vrcp.f32 %v1984_v0  ;;  %516 = vmatpush.bf16.msra.mxu0 %v1536_v1  ;;  %v1534_v4 = vld [vmem:[#allocation5 + $0x28] sm:$0xff]  ;;  %v2176_v5 = vld [vmem:[%s2161_s21] sm:$0xff]  ;;  %v2179_v6 = vld [vmem:[%s2161_s21 + $0x8] sm:$0xff]  ;;  %1680 = vset.pattern.permute.xlu0 %v1985_v36  ;;  %v1986_v37 = vmov 2   ;;  %v1987_v38 = vmov 0   ;;  %s2196_s15 = sshll.u32 %s2157_s22, 3 }
  0x44   : > { %v433_v8 = vadd.f32 %v2179_v6, %v2176_v5  ;;  %v1533_v9 = vld [vmem:[#allocation5 + $0x20] sm:$0xff]  ;;  %v1532_v13 = vld [vmem:[#allocation5 + $0x18] sm:$0xff]  ;;  %v2188_v14 = vld [vmem:[%s2161_s21 + $0x18] sm:$0xff]  ;;  %v530_v27 = vand.u32 127, %v529_v26  ;;  %1678 = vset.pattern.permute.xlu2 %v1986_v37  ;;  %1676 = vset.pattern.permute.xlu1 %v1987_v38  ;;  %s2367_s20 = scalar_lea.vmem [#allocation14], %s2196_s15  ;;  %v1988_v51 = vmov 3  }
  0x45   : > { %v2184_v10 = vld [vmem:[%s2161_s21 + $0x10] sm:$0xff]  ;;  %v1531_v17 = vld [vmem:[#allocation5 + $0x10] sm:$0xff]  ;;  %v1989_v52 = vmov 1   ;;  %v1552_v54 = vld [vmem:[#allocation7 + $0x74] sm:$0xf0]  ;;  %s2368_s1 = scalar_lea.vmem [#allocation10], %s2196_s15 }
  0x46   : > { %v436_v12 = vadd.f32 %v2184_v10, %v433_v8  ;;  %v2192_v18 = vld [vmem:[%s2161_s21 + $0x20] sm:$0xff]  ;;  %v1530_v21 = vld [vmem:[#allocation5 + $0x8] sm:$0xff]  ;;  %v1529_v24 = vld [vmem:[#allocation5] sm:$0xff]  ;;  %vm531_vm1 = vcmp.lt.s32.totalorder %v530_v27, 5  ;;  %s1327_s23 = sshll.u32 %s2157_s22, 4  ;;  %s1569_s25 = sshll.u32 %s2062_s13, 4 }
  0x47   : > { %517 = vmatpush.bf16.msra.mxu0 %v1535_v2  ;;  %v1428_v53 = vld [vmem:[#allocation7 + $0x70] sm:$0xf]  ;;  %v1551_v55 = vld [vmem:[#allocation7 + $0x74] sm:$0xf]  ;;  %v1430_v57 = vld [vmem:[#allocation7 + $0x78] sm:$0xf0]  ;;  %s1087_s11 = scalar_lea.hbm %s2360_s7, %s1569_s25 }
  0x48   : > { %v439_v16 = vadd.f32 %v2188_v14, %v436_v12  ;;  %v1429_v56 = vor.u32 %v1552_v54, %v1428_v53  ;;  %v1433_v58 = vor.u32 %v1551_v55, %v1430_v57  ;;  %v1420_v59 = vld [vmem:[#allocation7 + $0x60] sm:$0xf]  ;;  %v1550_v60 = vld [vmem:[#allocation7 + $0x64] sm:$0xf0]  ;;  %v1549_v61 = vld [vmem:[#allocation7 + $0x64] sm:$0xf] }
  0x49   : > { %v1683_v3 = vpop.eup %1682  ;;  %v1421_v62 = vor.u32 %v1550_v60, %v1420_v59  ;;  %v1422_v63 = vld [vmem:[#allocation7 + $0x68] sm:$0xf0]  ;;  %v1412_v1 = vld [vmem:[#allocation7 + $0x50] sm:$0xf]  ;;  %v1548_v2 = vld [vmem:[#allocation7 + $0x54] sm:$0xf0] }
  0x4a   : > { %v444_v7 = vmul.f32 5.0, %v1683_v3  ;;  %vm448_vm0 = vweird.f32 %v1683_v3  ;;  %v442_v20 = vadd.f32 %v2192_v18, %v439_v16  ;;  %702 = vmatpush.bf16.msra.mxu1 %v1429_v56  ;;  %715 = vmatpush.bf16.msra.mxu2 %v1433_v58  ;;  %v1425_v0 = vor.u32 %v1549_v61, %v1422_v63  ;;  %v1545_v12 = vld [vmem:[#allocation7 + $0x44] sm:$0xf]  ;;  %v1372_v36 = vld [vmem:[#allocation7] sm:$0xf]  ;;  %s415_s28 = scalar_lea.vmem [#allocation11], %s1327_s23 }
  0x4b   : > { %518 = vmatpush.bf16.msra.mxu0 %v1534_v4  ;;  %v1413_v4 = vor.u32 %v1548_v2, %v1412_v1  ;;  %v1541_v26 = vld [vmem:[#allocation7 + $0x24] sm:$0xf]  ;;  %v1538_v37 = vld [vmem:[#allocation7 + $0x4] sm:$0xf0]  ;;  %v2209_v55 = vld [vmem:[%s2357_s4] ss:$0 sm:$0xff] }
  0x4c   : > { %v445_v11 = vsub.f32 1.0, %v444_v7  ;;  %v1414_v7 = vld [vmem:[#allocation7 + $0x58] sm:$0xf0]  ;;  %v1537_v38 = vld [vmem:[#allocation7 + $0x4] sm:$0xf]  ;;  %s1051_s24 = sand.u32 1, %s2062_s13  }
  0x4d   : > { %s1089_s3 = sshll.u32 %s415_s28, 4  ;;  %s1091_s21 = sshll.u32 %s1087_s11, 4  ;;  %s1090_s3 = int_to_ptr.vmem [resolvable:$true] %s1089_s3  ;;  %s1092_s21 = int_to_ptr.hbm [resolvable:$true] %s1091_s21 }
  0x4e   : > { %v446_v15 = vmul.f32 %v1683_v3, %v445_v11  ;;  %703 = vmatpush.bf16.msra.mxu1 %v1421_v62  ;;  %716 = vmatpush.bf16.msra.mxu2 %v1425_v0  ;;  %v1546_v11 = vld [vmem:[#allocation7 + $0x44] sm:$0xf0]  ;;  %s2266_s18 = scalar_lea.sflag [#allocation12], %s1051_s24  ;;  %s1822_s26 = sshra.s32 %s1092_s21, 4  ;;  %s1823_s26 = int_to_ptr.hbm [resolvable:$true] %s1822_s26 }
  0x4f   : > { %519 = vmatpush.bf16.msra.mxu0 %v1533_v9  ;;  %v1404_v9 = vld [vmem:[#allocation7 + $0x40] sm:$0xf]  ;;  %s1824_s2 = scalar_lea.hbm %s1823_s26, 16  ;;  %p1829_p11 = scmp.lt.s32.totalorder %s1823_s26, %s2360_s7 }
  0x50   : > { %v447_v19 = vadd.f32 %v1683_v3, %v446_v15  ;;  %v1406_v15 = vld [vmem:[#allocation7 + $0x48] sm:$0xf0]  ;;  %p1825_p1 = scmp.ne.s32.totalorder %s1823_s26, %s1824_s2 }
  0x51   : > { %v1409_v16 = vor.u32 %v1545_v12, %v1406_v15  ;;  %v1554_v15 = vld [vmem:[#allocation8 + $0x8] sm:$0xff] }
  0x52   : > { %v449_v22 = vsel %vm448_vm0, %v1683_v3, %v447_v19  ;;  %v1547_v3 = vld [vmem:[#allocation7 + $0x54] sm:$0xf]  ;;  %704 = vmatpush.bf16.msra.mxu1 %v1413_v4  ;;  %v1544_v19 = vld [vmem:[#allocation7 + $0x34] sm:$0xf0]  ;;  %p1826_p4 = pnand %p1825_p1, %p2129_p7 }
  0x53   : > { %520 = vmatpush.bf16.msra.mxu0 %v1532_v13  ;;  %v450_v23 = vmul.f32 %v449_v22, %v442_v20  ;;  %v1417_v8 = vor.u32 %v1547_v3, %v1414_v7  ;;  %v1405_v13 = vor.u32 %v1546_v11, %v1404_v9  ;;  %v1543_v20 = vld [vmem:[#allocation7 + $0x34] sm:$0xf]  ;;  %v1398_v22 = vld [vmem:[#allocation7 + $0x38] sm:$0xf0]  ;;  %v1990_v3 = vmov 0.0  }
  0x54   : > { %p1827_p8 = pneg %p1826_p4 }
  0x55   : > { %v451_v25 = vpack.c.bf16 %v450_v23, %v450_v23  ;;  %717 = vmatpush.bf16.msra.mxu2 %v1417_v8  ;;  %v1401_v23 = vor.u32 %v1543_v20, %v1398_v22 }
  0x56   : > { %705 = vmatpush.bf16.msra.mxu1 %v1405_v13 }
  0x57   : > { %521 = vmatpush.bf16.msra.mxu0 %v1531_v17  ;;  %v1396_v17 = vld [vmem:[#allocation7 + $0x30] sm:$0xf] }
  0x59   : > { %718 = vmatpush.bf16.msra.mxu2 %v1409_v16 }
  0x5b   : > { %522 = vmatpush.bf16.msra.mxu0 %v1530_v21  ;;  %v1397_v21 = vor.u32 %v1544_v19, %v1396_v17 }
  0x5d   : > { %706 = vmatpush.bf16.msra.mxu1 %v1397_v21  ;;  %719 = vmatpush.bf16.msra.mxu2 %v1401_v23 }
  0x5f   : > { %523 = vmatpush.bf16.msra.mxu0 %v1529_v24  ;;  %v1388_v24 = vld [vmem:[#allocation7 + $0x20] sm:$0xf] }
  0x62   : > { %524 = vmatmul.bf16.vlgmr.msra.gmra.mxu0 %v451_v25  ;;  %v1542_v25 = vld [vmem:[#allocation7 + $0x24] sm:$0xf0] }
  0x63   : > { %v1389_v27 = vor.u32 %v1542_v25, %v1388_v24 }
  0x65   : > { %707 = vmatpush.bf16.msra.mxu1 %v1389_v27 }
  0xdf   : > { %v525_v28 = vpop.f32.mrf.mxu0 }
  0xe0   : > { %v532_v29 = vsel %vm531_vm1, %v525_v28, -inf  ;;  %v1390_v28 = vld [vmem:[#allocation7 + $0x28] sm:$0xf0] }
  0xe1   : > { %533 = vmax.xlane.f32.xlu0 %v532_v29 }
  0xe7   : > { %v527_v30 = vpop.f32.mrf.mxu0 }
  0xe8   : > { %v1380_v30 = vld [vmem:[#allocation7 + $0x10] sm:$0xf] }
 0x154   : > { %v534_v31 = vpop.xlane.xlu0 %533 }
 0x155   : > { %v535_v32 = vsub.f32 %v532_v29, %v534_v31  ;;  %v1393_v29 = vor.u32 %v1541_v26, %v1390_v28  ;;  %v1540_v31 = vld [vmem:[#allocation7 + $0x14] sm:$0xf0] }
 0x157   : > { %v536_v33 = vmul.f32 1.442695, %v535_v32  ;;  %720 = vmatpush.bf16.msra.mxu2 %v1393_v29  ;;  %v1539_v32 = vld [vmem:[#allocation7 + $0x14] sm:$0xf] }
 0x159   : > { %1684 = vpow2.f32 %v536_v33  ;;  %v1381_v33 = vor.u32 %v1540_v31, %v1380_v30 }
 0x15b   : > { %708 = vmatpush.bf16.msra.mxu1 %v1381_v33 }
 0x15f   : > { %v1685_v34 = vpop.eup %1684 }
 0x160   : > { %v538_v35 = vsel %vm531_vm1, %v1685_v34, 0.0  ;;  %v1382_v34 = vld [vmem:[#allocation7 + $0x18] sm:$0xf0] }
 0x161   : > { %539 = vadd.xlane.f32.xlu0 %v538_v35 }
 0x1d4   : > { %v540_v39 = vpop.xlane.xlu0 %539 }
 0x1d5   : > { %1686 = vrcp.f32 %v540_v39  ;;  %v552_v43 = vand.u32 2147483648, %v540_v39  ;;  %v550_v45 = vand.u32 2147483647, %v540_v39  ;;  %vm546_vm3 = vweird.f32 %v540_v39 }
 0x1d7   : > { %v553_v47 = vor.u32 1.1754944e-38, %v552_v43  ;;  %vm551_vm5 = vcmp.eq.f32.partialorder %v550_v45, 8.507059e+37 }
 0x1db   : > { %v1687_v40 = vpop.eup %1686 }
 0x1dc   : > { %v542_v41 = vmul.f32 %v1687_v40, %v540_v39  ;;  %vm547_vm2 = vweird.f32 %v1687_v40  ;;  %v1373_v39 = vor.u32 %v1538_v37, %v1372_v36 }
 0x1dd   : > { %vm548_vm4 = vmor %vm546_vm3, %vm547_vm2 }
 0x1de   : > { %v543_v42 = vsub.f32 1.0, %v542_v41  ;;  %709 = vmatpush.bf16.msra.mxu1 %v1373_v39 }
 0x1e0   : > { %v544_v44 = vmul.f32 %v1687_v40, %v543_v42 }
 0x1e2   : > { %v545_v46 = vadd.f32 %v1687_v40, %v544_v44 }
 0x1e4   : > { %v549_v48 = vsel %vm548_vm4, %v1687_v40, %v545_v46  ;;  %v1374_v40 = vld [vmem:[#allocation7 + $0x8] sm:$0xf0] }
 0x1e5   : > { %v554_v49 = vsel %vm551_vm5, %v553_v47, %v549_v48  ;;  %v1377_v41 = vor.u32 %v1537_v38, %v1374_v40 }
 0x1e6   : > { %v555_v50 = vmul.f32 %v554_v49, %v538_v35  ;;  %v1385_v35 = vor.u32 %v1539_v32, %v1382_v34 }
 0x1e8   : > { %587 = vperm.xlu0 %1680, %v555_v50   ;;  %573 = vperm.xlu2 %1678, %v555_v50   ;;  %556 = vst [vmem:[%s2367_s20] sm:$0xff] %v555_v50  ;;  %s1828_s20 = scalar_lea.hbm %s2360_s7, 32 }
 0x1e9   : > { %560 = vperm.xlu1 %1676, %v555_v50   ;;  %721 = vmatpush.bf16.msra.mxu2 %v1385_v35  ;;  %p1830_p9 = scmp.lt.s32.totalorder %s1828_s20, %s1824_s2 }
 0x1eb   : > { %p1831_p2 = por %p1830_p9, %p1829_p11 }
 0x1ed   : > { %722 = vmatpush.bf16.msra.mxu2 %v1377_v41  ;;  %p1832_p10 = pnand %p1831_p2, %p1827_p8 }
 0x1f0   : > { %1679 = vset.pattern.permute.xlu2 %v1988_v51 }
 0x1f1   : > { %1677 = vset.pattern.permute.xlu1 %v1989_v52  ;;  %580 = vperm.xlu2 %1679, %v555_v50  }
 0x1f2   : > { %566 = vperm.xlu1 %1677, %v555_v50  }
 0x242   : > { %v574_v43 = vpop.permute.xlu2 %573 }
 0x243   : > { %v576_v48 = vmul.f32 %v2184_v10, %v574_v43  ;;  %v594_v10 = vld [vmem:[%s2358_s5] sm:$0x3] }
 0x244   : > { %v619_v57 = vperm.slane %v594_v10, 1 }
 0x24b   : > { %v581_v47 = vpop.permute.xlu2 %580 }
 0x24c   : > { %v583_v51 = vmul.f32 %v2188_v14, %v581_v47 }
 0x25a   : > { %v588_v50 = vpop.permute.xlu0 %587 }
 0x25b   : > { %v561_v42 = vpop.permute.xlu1 %560  ;;  %v590_v53 = vmul.f32 %v2192_v18, %v588_v50  ;;  %v618_v18 = vperm.slane %v594_v10, 0 }
 0x25c   : > { %v563_v45 = vmul.f32 %v561_v42, %v2176_v5 }
 0x264   : > { %v567_v44 = vpop.permute.xlu1 %566 }
 0x265   : > { %v569_v46 = vmul.f32 %v2179_v6, %v567_v44 }
 0x267   : > { %v570_v49 = vadd.f32 %v569_v46, %v563_v45 }
 0x269   : > { %v577_v52 = vadd.f32 %v576_v48, %v570_v49 }
 0x26b   : > { %v584_v54 = vadd.f32 %v583_v51, %v577_v52 }
 0x26d   : > { %v591_v56 = vadd.f32 %v590_v53, %v584_v54 }
 0x26f   : > { %592 = vst [vmem:[%s2368_s1] sm:$0xff] %v591_v56  ;;  %v599_v5 = vsub.f32 %v591_v56, %v2209_v55 }
 0x271   : > { %v600_v6 = vpack.c.bf16 %v599_v5, %v599_v5 }
 0x273   : > { %710 = vmatmul.bf16.vlgmr.msra.gmra.mxu1 %v600_v6  ;;  %723 = vmatmul.bf16.vlgmr.msra.gmra.mxu2 %v600_v6 }
 0x2f0   : > { %v711_v14 = vpop.f32.mrf.mxu1 }
 0x2f1   : > { %v2218_v59 = vadd.f32 %v711_v14, %v618_v18 }
 0x2f6   : > { %v724_v58 = vpop.f32.mrf.mxu2 }
 0x2f7   : > { %v2220_v60 = vadd.f32 %v724_v58, %v619_v57 }
 0x2f8   : > { %v713_v61 = vpop.f32.mrf.mxu1 }
 0x2f9   : > { %v729_v62 = vmax.f32 %v2218_v59, %v2220_v60 }
 0x2fb   : > { %730 = vmax.xlane.f32.xlu1 %v729_v62  ;;  %v1560_v62 = vld [vmem:[#allocation8 + $0x38] sm:$0xff] }
 0x2fc   : > { %1019 = vmatpush.bf16.msra.mxu3 %v1560_v62 }
 0x2fe   : > { %v726_v63 = vpop.f32.mrf.mxu2 }
 0x2ff   : > { %v1568_v63 = vld [vmem:[#allocation8 + $0x78] sm:$0xff] }
 0x300   : > { %1032 = vmatpush.bf16.msrb.mxu0 %v1568_v63 }
 0x36e   : > { %v731_v0 = vpop.xlane.xlu1 %730 }
 0x36f   : > { %vm732_vm6 = vcmp.eq.f32.partialorder %v2218_v59, %v731_v0  ;;  %vm733_vm7 = vcmp.eq.f32.partialorder %v2220_v60, %v731_v0 }
 0x370   : > { %v747_v1 = vsel %vm732_vm6, -inf, %v2218_v59  ;;  %v748_v2 = vsel %vm733_vm7, -inf, %v2220_v60  ;;  %v1434_v4 = vsel %vm732_vm6, 1.0, %v1990_v3  ;;  %v1435_v7 = vsel %vm733_vm7, 1.0, %v1990_v3 }
 0x371   : > { %v750_v8 = vmax.f32 %v747_v1, %v748_v2  ;;  %v743_v9 = vadd.f32 %v1435_v7, %v1434_v4  ;;  %v1566_v4 = vld [vmem:[#allocation8 + $0x68] sm:$0xff]  ;;  %v1557_v7 = vld [vmem:[#allocation8 + $0x20] sm:$0xff] }
 0x373   : > { %751 = vmax.xlane.f32.xlu0 %v750_v8  ;;  %744 = vadd.xlane.f32.xlu2 %v743_v9  ;;  %v1565_v8 = vld [vmem:[#allocation8 + $0x60] sm:$0xff]  ;;  %v1556_v9 = vld [vmem:[#allocation8 + $0x18] sm:$0xff] }
 0x3e6   : > { %v752_v11 = vpop.xlane.xlu0 %751  ;;  %v745_v12 = vpop.xlane.xlu2 %744 }
 0x3e7   : > { %v746_v13 = vsub.f32 8.0, %v745_v12  ;;  %vm753_vm8 = vcmp.eq.f32.partialorder %v747_v1, %v752_v11  ;;  %vm754_vm10 = vcmp.eq.f32.partialorder %v748_v2, %v752_v11  ;;  %v1555_v12 = vld [vmem:[#allocation8 + $0x10] sm:$0xff] }
 0x3e9   : > { %vm2230_vm9 = vcmp.gt.f32.partialorder %v746_v13, 0.0 }
 0x3ea   : > { %vm757_vm11 = vmand %vm753_vm8, %vm2230_vm9  ;;  %v759_v26 = vsel %vm2230_vm9, %v752_v11, %v731_v0  ;;  %v1559_v0 = vld [vmem:[#allocation8 + $0x30] sm:$0xff]  ;;  %v1564_v11 = vld [vmem:[#allocation8 + $0x58] sm:$0xff] }
 0x3eb   : > { %vm758_vm12 = vmand %vm754_vm10, %vm2230_vm9  ;;  %v768_v16 = vsel %vm757_vm11, -inf, %v747_v1  ;;  %v1436_v17 = vsel %vm757_vm11, 1.0, %v1990_v3  ;;  %v1567_v1 = vld [vmem:[#allocation8 + $0x70] sm:$0xff]  ;;  %1020 = vmatpush.bf16.msra.mxu3 %v1559_v0 }
 0x3ec   : > { %v769_v19 = vsel %vm758_vm12, -inf, %v748_v2  ;;  %v1437_v20 = vsel %vm758_vm12, 1.0, %v1990_v3  ;;  %1033 = vmatpush.bf16.msrb.mxu0 %v1567_v1  ;;  %v1558_v2 = vld [vmem:[#allocation8 + $0x28] sm:$0xff] }
 0x3ed   : > { %v771_v21 = vmax.f32 %v768_v16, %v769_v19  ;;  %v764_v22 = vadd.f32 %v1437_v20, %v1436_v17 }
 0x3ef   : > { %772 = vmax.xlane.f32.xlu1 %v771_v21  ;;  %765 = vadd.xlane.f32.xlu2 %v764_v22 }
 0x3f0   : > { %1021 = vmatpush.bf16.msra.mxu3 %v1558_v2  ;;  %1034 = vmatpush.bf16.msrb.mxu0 %v1566_v4 }
 0x3f4   : > { %1022 = vmatpush.bf16.msra.mxu3 %v1557_v7  ;;  %1035 = vmatpush.bf16.msrb.mxu0 %v1565_v8 }
 0x3f8   : > { %1023 = vmatpush.bf16.msra.mxu3 %v1556_v9  ;;  %1036 = vmatpush.bf16.msrb.mxu0 %v1564_v11 }
 0x3fc   : > { %1024 = vmatpush.bf16.msra.mxu3 %v1555_v12 }
 0x400   : > { %1025 = vmatpush.bf16.msra.mxu3 %v1554_v15 }
 0x462   : > { %v773_v23 = vpop.xlane.xlu1 %772  ;;  %v766_v24 = vpop.xlane.xlu2 %765 }
 0x463   : > { %v767_v25 = vsub.f32 %v746_v13, %v766_v24  ;;  %vm774_vm13 = vcmp.eq.f32.partialorder %v768_v16, %v773_v23  ;;  %vm775_vm15 = vcmp.eq.f32.partialorder %v769_v19, %v773_v23  ;;  %v1563_v13 = vld [vmem:[#allocation8 + $0x50] sm:$0xff] }
 0x464   : > { %1037 = vmatpush.bf16.msrb.mxu0 %v1563_v13 }
 0x465   : > { %vm770_vm14 = vcmp.gt.f32.partialorder %v767_v25, 0.0 }
 0x466   : > { %v780_v27 = vsel %vm770_vm14, %v773_v23, %v759_v26  ;;  %vm778_vm0 = vmand %vm774_vm13, %vm770_vm14 }
 0x467   : > { %vm779_vm1 = vmand %vm775_vm15, %vm770_vm14  ;;  %v789_v28 = vsel %vm778_vm0, -inf, %v768_v16  ;;  %v1438_v29 = vsel %vm778_vm0, 1.0, %v1990_v3  ;;  %v1562_v16 = vld [vmem:[#allocation8 + $0x48] sm:$0xff] }
 0x468   : > { %v790_v30 = vsel %vm779_vm1, -inf, %v769_v19  ;;  %v1439_v31 = vsel %vm779_vm1, 1.0, %v1990_v3  ;;  %1038 = vmatpush.bf16.msrb.mxu0 %v1562_v16 }
 0x469   : > { %v792_v32 = vmax.f32 %v789_v28, %v790_v30  ;;  %v785_v33 = vadd.f32 %v1439_v31, %v1438_v29  ;;  %v1561_v29 = vld [vmem:[#allocation8 + $0x40] sm:$0xff] }
 0x46b   : > { %793 = vmax.xlane.f32.xlu1 %v792_v32  ;;  %786 = vadd.xlane.f32.xlu2 %v785_v33 }
 0x46c   : > { %1039 = vmatpush.bf16.msrb.mxu0 %v1561_v29 }
 0x4de   : > { %v794_v34 = vpop.xlane.xlu1 %793  ;;  %v787_v35 = vpop.xlane.xlu2 %786 }
 0x4df   : > { %v788_v36 = vsub.f32 %v767_v25, %v787_v35  ;;  %vm795_vm2 = vcmp.eq.f32.partialorder %v789_v28, %v794_v34  ;;  %vm796_vm4 = vcmp.eq.f32.partialorder %v790_v30, %v794_v34 }
 0x4e1   : > { %vm791_vm3 = vcmp.gt.f32.partialorder %v788_v36, 0.0 }
 0x4e2   : > { %v801_v37 = vsel %vm791_vm3, %v794_v34, %v780_v27  ;;  %vm799_vm5 = vmand %vm795_vm2, %vm791_vm3 }
 0x4e3   : > { %vm800_vm6 = vmand %vm796_vm4, %vm791_vm3  ;;  %v810_v38 = vsel %vm799_vm5, -inf, %v789_v28  ;;  %v1440_v39 = vsel %vm799_vm5, 1.0, %v1990_v3  ;;  %v1553_v28 = vld [vmem:[#allocation8] sm:$0xff] }
 0x4e4   : > { %v811_v40 = vsel %vm800_vm6, -inf, %v790_v30  ;;  %v1441_v41 = vsel %vm800_vm6, 1.0, %v1990_v3  ;;  %1026 = vmatpush.bf16.msra.mxu3 %v1553_v28 }
 0x4e5   : > { %v813_v42 = vmax.f32 %v810_v38, %v811_v40  ;;  %v806_v43 = vadd.f32 %v1441_v41, %v1440_v39 }
 0x4e7   : > { %814 = vmax.xlane.f32.xlu1 %v813_v42  ;;  %807 = vadd.xlane.f32.xlu2 %v806_v43 }
 0x55a   : > { %v815_v44 = vpop.xlane.xlu1 %814  ;;  %v808_v45 = vpop.xlane.xlu2 %807 }
 0x55b   : > { %v809_v46 = vsub.f32 %v788_v36, %v808_v45  ;;  %vm816_vm7 = vcmp.eq.f32.partialorder %v810_v38, %v815_v44  ;;  %vm817_vm9 = vcmp.eq.f32.partialorder %v811_v40, %v815_v44  ;;  %v1516_v36 = vpack.c.bf16 %v2220_v60, %v2220_v60 }
 0x55d   : > { %vm812_vm8 = vcmp.gt.f32.partialorder %v809_v46, 0.0 }
 0x55e   : > { %v822_v47 = vsel %vm812_vm8, %v815_v44, %v801_v37  ;;  %vm820_vm10 = vmand %vm816_vm7, %vm812_vm8 }
 0x55f   : > { %vm821_vm11 = vmand %vm817_vm9, %vm812_vm8  ;;  %v831_v48 = vsel %vm820_vm10, -inf, %v810_v38  ;;  %v1442_v49 = vsel %vm820_vm10, 1.0, %v1990_v3 }
 0x560   : > { %v832_v50 = vsel %vm821_vm11, -inf, %v811_v40  ;;  %v1443_v51 = vsel %vm821_vm11, 1.0, %v1990_v3 }
 0x561   : > { %v834_v52 = vmax.f32 %v831_v48, %v832_v50  ;;  %v827_v53 = vadd.f32 %v1443_v51, %v1442_v49 }
 0x563   : > { %835 = vmax.xlane.f32.xlu1 %v834_v52  ;;  %828 = vadd.xlane.f32.xlu2 %v827_v53 }
 0x5d6   : > { %v836_v54 = vpop.xlane.xlu1 %835  ;;  %v829_v56 = vpop.xlane.xlu2 %828 }
 0x5d7   : > { %v830_v5 = vsub.f32 %v809_v46, %v829_v56  ;;  %vm837_vm12 = vcmp.eq.f32.partialorder %v831_v48, %v836_v54  ;;  %vm838_vm14 = vcmp.eq.f32.partialorder %v832_v50, %v836_v54 }
 0x5d9   : > { %vm833_vm13 = vcmp.gt.f32.partialorder %v830_v5, 0.0 }
 0x5da   : > { %v843_v6 = vsel %vm833_vm13, %v836_v54, %v822_v47  ;;  %vm841_vm15 = vmand %vm837_vm12, %vm833_vm13 }
 0x5db   : > { %vm842_vm0 = vmand %vm838_vm14, %vm833_vm13  ;;  %v852_v10 = vsel %vm841_vm15, -inf, %v831_v48  ;;  %v1444_v14 = vsel %vm841_vm15, 1.0, %v1990_v3 }
 0x5dc   : > { %v853_v18 = vsel %vm842_vm0, -inf, %v832_v50  ;;  %v1445_v57 = vsel %vm842_vm0, 1.0, %v1990_v3 }
 0x5dd   : > { %v855_v58 = vmax.f32 %v852_v10, %v853_v18  ;;  %v848_v61 = vadd.f32 %v1445_v57, %v1444_v14 }
 0x5df   : > { %856 = vmax.xlane.f32.xlu1 %v855_v58  ;;  %849 = vadd.xlane.f32.xlu2 %v848_v61 }
 0x652   : > { %v857_v17 = vpop.xlane.xlu1 %856  ;;  %v850_v19 = vpop.xlane.xlu2 %849 }
 0x653   : > { %v851_v20 = vsub.f32 %v830_v5, %v850_v19  ;;  %vm858_vm1 = vcmp.eq.f32.partialorder %v852_v10, %v857_v17  ;;  %vm859_vm3 = vcmp.eq.f32.partialorder %v853_v18, %v857_v17 }
 0x655   : > { %vm854_vm2 = vcmp.gt.f32.partialorder %v851_v20, 0.0 }
 0x656   : > { %v864_v21 = vsel %vm854_vm2, %v857_v17, %v843_v6  ;;  %vm862_vm4 = vmand %vm858_vm1, %vm854_vm2 }
 0x657   : > { %vm863_vm5 = vmand %vm859_vm3, %vm854_vm2  ;;  %v873_v22 = vsel %vm862_vm4, -inf, %v852_v10  ;;  %v1446_v23 = vsel %vm862_vm4, 1.0, %v1990_v3 }
 0x658   : > { %v874_v24 = vsel %vm863_vm5, -inf, %v853_v18  ;;  %v1447_v25 = vsel %vm863_vm5, 1.0, %v1990_v3  ;;  %v1513_v3 = vpack.c.bf16 %v2218_v59, %v2218_v59 }
 0x659   : > { %v876_v26 = vmax.f32 %v873_v22, %v874_v24  ;;  %v869_v27 = vadd.f32 %v1447_v25, %v1446_v23 }
 0x65b   : > { %877 = vmax.xlane.f32.xlu0 %v876_v26  ;;  %870 = vadd.xlane.f32.xlu2 %v869_v27 }
 0x6ce   : > { %v871_v30 = vpop.xlane.xlu2 %870  ;;  %v878_v32 = vpop.xlane.xlu0 %877 }
 0x6cf   : > { %v872_v31 = vsub.f32 %v851_v20, %v871_v30 }
 0x6d1   : > { %vm875_vm6 = vcmp.gt.f32.partialorder %v872_v31, 0.0 }
 0x6d2   : > { %v879_v33 = vsel %vm875_vm6, %v878_v32, %v864_v21 }
 0x6d3   : > { %vm881_vm7 = vcmp.ge.f32.partialorder %v2220_v60, %v879_v33  ;;  %vm880_vm8 = vcmp.ge.f32.partialorder %v2218_v59, %v879_v33 }
 0x6d4   : > { %v883_v34 = vsel %vm881_vm7, %v2220_v60, 0.0  ;;  %v882_v35 = vsel %vm880_vm8, %v2218_v59, 0.0  ;;  %vm1512_vm9 = vmpackc.low %vm880_vm8, %vm880_vm8 }
 0x6d5   : > { %888 = vst [vmem:[%s415_s28 + $0x8] sm:$0xff] %v883_v34  ;;  %1514 = vmatmul.msk.bf16.vlgmr.msra.gmra.mxu3 %vm1512_vm9, %v1513_v3  ;;  %vm1515_vm10 = vmpackc.low %vm881_vm7, %vm881_vm7 }
 0x6d6   : > { %887 = vst [vmem:[%s415_s28] sm:$0xff] %v882_v35  ;;  %1517 = vmatmul.msk.bf16.vlgmr.msrb.gmra.mxu0 %vm1515_vm10, %v1516_v36 }
 0x6d7   : > { %1835 = shalt.err (!%p1832_p10)
}
 0x6d8   : > { %1587 = dma.vmem_to_hbm [thread:$0]  (%p2129_p7), %s1090_s3, 256, %s1092_s21, %s2266_s18  }
 0x6d9   : > { %s2280_s28 = sshll.u32 %s2062_s13, 3  ;;  %s2387_s25 = scalar_lea.vmem [#allocation10], %s2196_s15 }
 0x6da   : > { %s1074_s24 = sshll.u32 %s2387_s25, 4  ;;  %s1072_s20 = scalar_lea.hbm %s2359_s6, %s2280_s28  ;;  %s1075_s24 = int_to_ptr.vmem [resolvable:$true] %s1074_s24 }
 0x6db   : > { %s1076_s11 = sshll.u32 %s1072_s20, 4  ;;  %s1047_s26 = scalar_lea.sflag [#allocation4], %s2157_s22  ;;  %s1077_s11 = int_to_ptr.hbm [resolvable:$true] %s1076_s11 }
 0x6dc   : > { %s1850_s2 = sshra.s32 %s1077_s11, 4  ;;  %s1856_s21 = scalar_lea.hbm %s2359_s6, 16  ;;  %s1851_s2 = int_to_ptr.hbm [resolvable:$true] %s1850_s2 }
 0x6dd   : > { %s1852_s29 = scalar_lea.hbm %s1851_s2, 8  ;;  %p1857_p3 = scmp.lt.s32.totalorder %s1851_s2, %s2359_s6 }
 0x6de   : > { %p1853_p12 = scmp.ne.s32.totalorder %s1851_s2, %s1852_s29  ;;  %p1858_p5 = scmp.lt.s32.totalorder %s1856_s21, %s1852_s29 }
 0x6e0   : > { %p1854_p13 = pnand %p1853_p12, %p2129_p7  ;;  %p1859_p1 = por %p1858_p5, %p1857_p3 }
 0x6e2   : > { %p1855_p0 = pneg %p1854_p13 }
 0x6e4   : > { %p1860_p4 = pnand %p1859_p1, %p1855_p0 }
 0x6e6   : > { %1863 = shalt.err (!%p1860_p4)
}
 0x6e7   : > { %1586 = dma.vmem_to_hbm [thread:$0]  (%p2129_p7), %s1075_s24, 128, %s1077_s11, %s1047_s26  }
 0x6e8   : > { %s1115_s1 = scalar_lea.hbm %s2362_s9, %s2280_s28  ;;  %s2388_s20 = scalar_lea.vmem [#allocation14], %s2196_s15 }
 0x6e9   : > { %s1117_s13 = sshll.u32 %s2388_s20, 4  ;;  %s1119_s3 = sshll.u32 %s1115_s1, 4  ;;  %s1118_s13 = int_to_ptr.vmem [resolvable:$true] %s1117_s13  ;;  %s1120_s3 = int_to_ptr.hbm [resolvable:$true] %s1119_s3 }
 0x6ea   : > { %s1062_s2 = scalar_lea.sflag [#allocation15], %s2157_s22  ;;  %s1878_s29 = sshra.s32 %s1120_s3, 4  ;;  %s1879_s29 = int_to_ptr.hbm [resolvable:$true] %s1878_s29 }
 0x6eb   : > { %s1880_s21 = scalar_lea.hbm %s1879_s29, 8  ;;  %s1884_s24 = scalar_lea.hbm %s2362_s9, 16 }
 0x6ec   : > { %p1881_p8 = scmp.ne.s32.totalorder %s1879_s29, %s1880_s21  ;;  %p1885_p2 = scmp.lt.s32.totalorder %s1879_s29, %s2362_s9 }
 0x6ed   : > { %p1886_p10 = scmp.lt.s32.totalorder %s1884_s24, %s1880_s21 }
 0x6ee   : > { %p1882_p11 = pnand %p1881_p8, %p2129_p7 }
 0x6ef   : > { %p1887_p12 = por %p1886_p10, %p1885_p2 }
 0x6f0   : > { %p1883_p9 = pneg %p1882_p11 }
 0x6f2   : > { %p1888_p13 = pnand %p1887_p12, %p1883_p9 }
 0x6f4   : > { %1891 = shalt.err (!%p1888_p13)
}
 0x6f5   : > { %1589 = dma.vmem_to_hbm [thread:$0]  (%p2129_p7), %s1118_s13, 128, %s1120_s3, %s1062_s2  }
 0x6f6   : > { %s1101_s19 = scalar_lea.hbm %s2361_s8, %s2280_s28  ;;  %s422_s1 = scalar_lea.vmem [#allocation13], %s2196_s15 }
 0x6f7   : > { %s1103_s20 = sshll.u32 %s422_s1, 4  ;;  %s1105_s23 = sshll.u32 %s1101_s19, 4  ;;  %s1104_s20 = int_to_ptr.vmem [resolvable:$true] %s1103_s20  ;;  %s1106_s23 = int_to_ptr.hbm [resolvable:$true] %s1105_s23 }
 0x6f8   : > { %s1906_s29 = sshra.s32 %s1106_s23, 4  ;;  %s1912_s15 = scalar_lea.hbm %s2361_s8, 16  ;;  %s1907_s29 = int_to_ptr.hbm [resolvable:$true] %s1906_s29 }
 0x6f9   : > { %s1908_s13 = scalar_lea.hbm %s1907_s29, 8  ;;  %p1913_p1 = scmp.lt.s32.totalorder %s1907_s29, %s2361_s8 }
 0x6fa   : > { %p1909_p0 = scmp.ne.s32.totalorder %s1907_s29, %s1908_s13  ;;  %p1914_p4 = scmp.lt.s32.totalorder %s1912_s15, %s1908_s13 }
 0x6fc   : > { %p1910_p3 = pnand %p1909_p0, %p2129_p7  ;;  %p1915_p8 = por %p1914_p4, %p1913_p1 }
 0x6fe   : > { %p1911_p5 = pneg %p1910_p3 }
 0x700   : > { %p1916_p11 = pnand %p1915_p8, %p1911_p5 }
 0x753   : > { %v1041_v59 = vpop.f32.mrf.mxu0 }
 0x758   : > { %v1028_v60 = vpop.f32.mrf.mxu3 }
 0x759   : > { %v1029_v37 = vadd.f32 %v2209_v55, %v1028_v60 }
 0x75b   : > { %v1042_v38 = vadd.f32 %v1041_v59, %v1029_v37  ;;  %v1043_v39 = vpop.f32.mrf.mxu0 }
 0x75d   : > { %1045 = vst [vmem:[%s422_s1] sm:$0xff] %v1042_v38 }
 0x75e   : > { %1919 = shalt.err (!%p1916_p11)
}
 0x75f   : > { %1588 = dma.vmem_to_hbm [thread:$0]  (%p2129_p7), %s1104_s20, 128, %s1106_s23, %s2266_s18  }
 0x760   : > { %v1030_v55 = vpop.f32.mrf.mxu3 }
 0x761 PF: > { %s1131_s27 = sand.u32 1, %s1962_s30   ;;  %p2389_p9 = scmp.ge.s32.totalorder %s1974_s12, 2 }
 0x762   : > { %s1132_s24 = scalar_lea.sflag [#allocation4], %s1131_s27 }
 0x763   : > { %p1609_p2 = pnand %p2389_p9, %p2078_p6 }
 0x765   : > { %p1610_p10 = pneg %p1609_p2 }
 0x767   : > { %1949 = dma.done.wait (%p1610_p10), %s1132_s24, 128  }
 0x768   : > { %1951 = vsyncadd (%p1610_p10), %s1132_s24, 4294967168  ;;  %s2390_s11 = sadd.s32 4294967294, %s1974_s12  }
 0x769   : > { %s1141_s26 = sand.u32 1, %s2390_s11  }
 0x76a   : > { %s1142_s22 = scalar_lea.sflag [#allocation12], %s1141_s26 }
 0x76b   : > { %1953 = dma.done.wait (%p1610_p10), %s1142_s22, 384  }
 0x76c   : > { %1955 = vsyncadd (%p1610_p10), %s1142_s22, 4294966912  ;;  %s1162_s17 = scalar_lea.sflag [#allocation15], %s1131_s27 }
 0x76d   : > { %1957 = dma.done.wait (%p1610_p10), %s1162_s17, 128  }
 0x76e   : > { %1959 = vsyncadd (%p1610_p10), %s1162_s17, 4294967168  ;;  %s2391_s18 = sld [smem:[#allocation22_spill]]  ;;  %p31_p7 = scmp.ge.s32.totalorder %s2115_s14, 4  }
 0x76f   : > { %s2392_s11 = sld [smem:[#allocation23_spill]]  ;;  %s2393_s30 = smov %s1966_s10 }
 0x770   : > { %s2395_s12 = smov %s2115_s14  ;;  %33 = sbr.rel (!%p31_p7) target bundleno = 15 (0xf), region = 155 }
 0x774   : > { %s2394_s10 = smov %s2391_s18 }
 0x775   :  { %1168 = vsyncpa [#allocation3], 1 }
 0x776   :  { %1170 = vsyncpa [#allocation3 + $0x1], 1 }
 0x777   :  { %1171 = vsyncpa [#allocation6], 1 }
 0x778   :  { %1172 = vsyncpa [#allocation9], 1 }
 0x779   :  { %1173 = vsyncpa [#allocation4], 1 }
 0x77a   :  { %1175 = vsyncpa [#allocation4 + $0x1], 1 }
 0x77b   :  { %1176 = vsyncpa [#allocation12], 1 }
 0x77c   :  { %1178 = vsyncpa [#allocation12 + $0x1], 1 }
 0x77d   :  { %1179 = vsyncpa [#allocation15], 1 }
 0x77e   :  { %1181 = vsyncpa [#allocation15 + $0x1], 1 }

</bundles_post_ra>
